<compile_context>
chip_gen: v7x
topology: tpu7x:2x2x1
jax: 0.10.0
libtpu: 0.0.40
codegen_flags: <defaults>
</compile_context>

<pallas_src>
import jax
import jax.numpy as jnp
from jax import lax
from jax.experimental import pallas as pl
from jax.experimental.pallas import tpu as pltpu

LN_EPS = 1e-5


def _round_up(v, m):
    return (v + m - 1) // m * m


def _plan(B, H, W, C):
    """Pick row tile (to), chunk rows (cy) and VMEM limit for this shape."""
    C2 = 2 * C
    Ho = (H - 1) // 2 + 1
    Wo = (W - 1) // 2 + 1
    WP = _round_up(Wo, 16)                    # padded output width (sublane-friendly)
    ch = 3 * C                                # packed slab channels (3 kx taps)
    ch_pad = _round_up(ch, 128)               # lane-padded width for VMEM estimates

    # Generation-aware VMEM budget (v5e/v6e: 128 MiB physical; v7x: 64 MiB/TC).
    try:
        cap = int(pltpu.get_tpu_info().vmem_capacity_bytes)
    except Exception:
        cap = 64 << 20                        # conservative (v7x-safe) default
    if cap >= (100 << 20):
        budget, limit = 96 << 20, 112 << 20
    else:
        budget, limit = 36 << 20, 48 << 20

    w_bytes = 2 * 3 * ch * C2 * 2 + (1 << 16)          # weights (allow 2 buffers) + slack
    per_row = 8 * WP * (ch_pad + C2)                    # dbl-buffered slab + out, per to-row
    to_vmem = max(1, (budget - w_bytes - 8 * WP * ch_pad) // per_row)

    to_target = max(1, 4096 // WP)                      # ~4K output px per grid step
    min_steps = 4                                       # >= 2 steps per v7x TensorCore
    nh_min = -(-min_steps // B) if B < min_steps else 1
    to_steps = max(1, -(-Ho // nh_min))

    row_target = max(16, 32768 // C2)                   # keep chunk acc ~<=128 KiB (vregs)
    cy = max(1, row_target // WP)                       # output rows (oy) per chunk

    to = max(1, min(to_target, to_vmem, to_steps, Ho, 32 * cy))
    cy = min(cy, to)
    to = max(cy, (to // cy) * cy)                       # whole chunks per tile
    nh = -(-Ho // to)

    need = 4 * (to + 1) * WP * ch_pad * 2 + 8 * to * WP * C2 + w_bytes
    limit = max(limit, need + (4 << 20))
    return Ho, Wo, WP, to, cy, nh, limit


def _make_kernel(WP, L, n_chunks):
    """Fused 3x3/stride-2 conv (3 K-packed MXU matmuls per chunk) + LayerNorm."""

    def kernel(x_ref, w_ref, g_ref, b_ref, o_ref):
        # x_ref: (1, 2, (to+1)*WP, 3C) bf16   phase-packed slab (flat rows, +1 halo row)
        # w_ref: (3, 3C, C2)          bf16   conv weight, kx folded into K
        # g_ref, b_ref: (1, C2)       f32    LayerNorm gamma / beta
        # o_ref: (1, to*WP, C2)              normalized output rows
        for ci in range(n_chunks):
            s = ci * L
            # ky = 0: phase h%2=0, row offset 0
            acc = jnp.dot(x_ref[0, 0, s:s + L, :], w_ref[0],
                          preferred_element_type=jnp.float32)
            # ky = 1: phase h%2=1, row offset 0
            acc = acc + jnp.dot(x_ref[0, 1, s:s + L, :], w_ref[1],
                                preferred_element_type=jnp.float32)
            # ky = 2: phase h%2=0, row offset +1 output row (aligned: multiple of WP)
            acc = acc + jnp.dot(x_ref[0, 0, s + WP:s + WP + L, :], w_ref[2],
                                preferred_element_type=jnp.float32)

            # Two-pass (mean-centred) LayerNorm on the register-resident chunk.
            mean = jnp.mean(acc, axis=-1, keepdims=True)
            xc = acc - mean
            var = jnp.mean(xc * xc, axis=-1, keepdims=True)
            scale = g_ref[...] * lax.rsqrt(var + LN_EPS)        # (L, C2), EUP rsqrt
            o_ref[0, s:s + L, :] = (xc * scale + b_ref[...]).astype(o_ref.dtype)

    return kernel


def conv_downsampler(x, w_hwio, gamma, beta, *, single_buffer_invariants=True):
    """x: (B,H,W,C) f32; w_hwio: (3,3,C,2C); gamma/beta: (2C,) -> (B,Ho,Wo,2C)."""
    B, H, W, C = x.shape
    C2 = 2 * C
    ch = 3 * C
    Ho, Wo, WP, to, cy, nh, vmem_limit = _plan(B, H, W, C)
    Ho_p = nh * to
    G = B * nh
    T = to * WP
    L = cy * WP
    n_chunks = to // cy
    assert T == n_chunks * L

    # Pad so every (h%2) phase plane has Ho_p+1 rows and every kx-shifted
    # column group has WP columns (top/left pad 1 = conv padding).
    Hp = 2 * (Ho_p + 1)
    Wp = 2 * WP + 2
    xb = x.astype(jnp.bfloat16)
    xp = jnp.pad(xb, ((0, 0), (1, Hp - 1 - H), (1, Wp - 1 - W), (0, 0)))

    # Phase/kx packing (strided slices + concat only -- fully fusible, no gather):
    #   slab[b, py, r, c, g*C:(g+1)*C] = x_pad[b, 2r+py, 2c+g, :]
    def _plane(py):
        return jnp.concatenate(
            [xp[:, py::2, g:g + 2 * WP:2, :] for g in range(3)], axis=-1)

    xs = jnp.stack([_plane(0), _plane(1)], axis=1)      # (B, 2, Ho_p+1, WP, 3C)

    # Group output rows into tiles of `to`, adding the single halo row per tile
    # via a strided slice + concat (no jnp.take, negligible duplication).
    if nh == 1:
        xt6 = xs[:, :, None]                            # (B, 2, 1, to+1, WP, 3C)
    else:
        main = xs[:, :, :Ho_p].reshape(B, 2, nh, to, WP, ch)
        halo = xs[:, :, to:Ho_p + 1:to][:, :, :, None]  # (B, 2, nh, 1, WP, 3C)
        xt6 = jnp.concatenate([main, halo], axis=3)     # (B, 2, nh, to+1, WP, 3C)
    xt = jnp.transpose(xt6, (0, 2, 1, 3, 4, 5)).reshape(G, 2, (to + 1) * WP, ch)

    # Weight: (3,3,C,C2) -> (3, 3C, C2); kx folded into the contraction dim.
    wf = w_hwio.reshape(3, ch, C2).astype(jnp.bfloat16)
    g2 = gamma.reshape(1, C2).astype(jnp.float32)
    b2 = beta.reshape(1, C2).astype(jnp.float32)

    def _inv_spec(shape):
        idx = lambda i, n=len(shape): (0,) * n
        if single_buffer_invariants:
            return pl.BlockSpec(shape, idx, pipeline_mode=pl.Buffered(1))
        return pl.BlockSpec(shape, idx)

    cost = pl.CostEstimate(
        flops=2 * G * T * 9 * C * C2,
        transcendentals=G * T,
        bytes_accessed=xt.size * 2 + wf.size * 2 + G * T * C2 * 4,
    )

    out = pl.pallas_call(
        _make_kernel(WP, L, n_chunks),
        out_shape=jax.ShapeDtypeStruct((G, T, C2), x.dtype),
        grid_spec=pltpu.PrefetchScalarGridSpec(
            num_scalar_prefetch=0,
            grid=(G,),
            in_specs=[
                pl.BlockSpec((1, 2, (to + 1) * WP, ch),
                             lambda i: (i, 0, 0, 0)),
                _inv_spec((3, ch, C2)),
                _inv_spec((1, C2)),
                _inv_spec((1, C2)),
            ],
            out_specs=pl.BlockSpec((1, T, C2), lambda i: (i, 0, 0)),
        ),
        compiler_params=pltpu.CompilerParams(
            dimension_semantics=("parallel",),
            vmem_limit_bytes=int(vmem_limit),
        ),
        cost_estimate=cost,
    )(xt, wf, g2, b2)

    # Row-major compatible reshapes; the pad-row/column slice fuses downstream.
    out = out.reshape(B, nh, to, WP, C2).reshape(B, Ho_p, WP, C2)
    return out[:, :Ho, :Wo, :]


def reference(x, w_hwio, gamma, beta):
    y = lax.conv_general_dilated(
        x, w_hwio,
        window_strides=(2, 2),
        padding=((1, 1), (1, 1)),
        dimension_numbers=("NHWC", "HWIO", "NHWC"),
    )
    mean = jnp.mean(y, axis=-1, keepdims=True)
    var = jnp.mean((y - mean) ** 2, axis=-1, keepdims=True)
    return (y - mean) / jnp.sqrt(var + LN_EPS) * gamma + beta


if __name__ == "__main__":
    dim = 64          # smallest real DiNAT stage width; C2 = 128 -> lane-dense
    B, H, W = 2, 16, 16

    key = jax.random.PRNGKey(0)
    k_x, k_w, k_g, k_b = jax.random.split(key, 4)
    x = jax.random.normal(k_x, (B, H, W, dim), dtype=jnp.float32)
    # Conv2d(dim, 2*dim, 3, stride 2, pad 1, bias=False) weight stored HWIO
    # for NHWC conv (PyTorch OIHW -> transpose(2, 3, 1, 0)).
    w_hwio = 0.1 * jax.random.normal(k_w, (3, 3, dim, 2 * dim), dtype=jnp.float32)
    gamma = 1.0 + 0.05 * jax.random.normal(k_g, (2 * dim,), dtype=jnp.float32)
    beta = 0.05 * jax.random.normal(k_b, (2 * dim,), dtype=jnp.float32)

    fn = jax.jit(conv_downsampler, static_argnames=("single_buffer_invariants",))
    try:
        out = jax.block_until_ready(
            fn(x, w_hwio, gamma, beta, single_buffer_invariants=True))
    except Exception:
        # pl.Buffered(1) (single-buffered invariant operands) unsupported on
        # this jax build -- fall back to default double buffering.
        out = jax.block_until_ready(
            fn(x, w_hwio, gamma, beta, single_buffer_invariants=False))

    ref = reference(x, w_hwio, gamma, beta)
    assert out.shape == (B, H // 2, W // 2, 2 * dim), out.shape
    # bf16 MXU feed -> looser tolerance than the pure-f32 reference.
    max_err = float(jnp.max(jnp.abs(out - ref)))
    assert jnp.allclose(out, ref, atol=5e-2, rtol=5e-2), max_err
    print("KERNEL_OK")
</pallas_src>

<mosaic_0001>
module attributes {stable_mosaic.version = 11 : i64} {
  func.func @kernel(%arg0: i32, %arg1: memref<1x2x80x192xbf16, #tpu.memory_space<vmem>>, %arg2: memref<3x192x128xbf16, #tpu.memory_space<vmem>>, %arg3: memref<1x128xf32, #tpu.memory_space<vmem>>, %arg4: memref<1x128xf32, #tpu.memory_space<vmem>>, %arg5: memref<1x64x128xf32, #tpu.memory_space<vmem>>) attributes {dimension_semantics = [#tpu.dimension_semantics<parallel>], iteration_bounds = array<i64: 4>, scalar_prefetch = 0 : i64, scratch_operands = 0 : i64, tpu.core_type = #tpu.core_type<tc>, window_params = [{transform_indices = @transform_0, window_bounds = array<i64: 1, 2, 80, 192>}, {pipeline_mode = #tpu.pipeline_mode<synchronous>, transform_indices = @transform_1, window_bounds = array<i64: 3, 192, 128>}, {pipeline_mode = #tpu.pipeline_mode<synchronous>, transform_indices = @transform_2, window_bounds = array<i64: 1, 128>}, {pipeline_mode = #tpu.pipeline_mode<synchronous>, transform_indices = @transform_3, window_bounds = array<i64: 1, 128>}, {transform_indices = @transform_4, window_bounds = array<i64: 1, 64, 128>}]} {
    %c0 = arith.constant 0 : index
    %c0_0 = arith.constant 0 : index
    %c0_1 = arith.constant 0 : index
    %c0_2 = arith.constant 0 : index
    %0 = vector.load %arg1[%c0, %c0_0, %c0_1, %c0_2] : memref<1x2x80x192xbf16, #tpu.memory_space<vmem>>, vector<1x1x64x192xbf16>
    %1 = vector.shape_cast %0 : vector<1x1x64x192xbf16> to vector<64x192xbf16>
    %c0_3 = arith.constant 0 : index
    %c0_4 = arith.constant 0 : index
    %c0_5 = arith.constant 0 : index
    %2 = vector.load %arg2[%c0_3, %c0_4, %c0_5] : memref<3x192x128xbf16, #tpu.memory_space<vmem>>, vector<1x192x128xbf16>
    %3 = vector.shape_cast %2 : vector<1x192x128xbf16> to vector<192x128xbf16>
    %cst = arith.constant dense<0.000000e+00> : vector<64x128xf32>
    %4 = tpu.matmul %1, %3, %cst {dimension_numbers = #tpu.dot_dimension_numbers<[1], [0], [0], [1], [0, 0, 1, 1], [], []>} : vector<64x192xbf16>, vector<192x128xbf16>, vector<64x128xf32> -> vector<64x128xf32>
    %c0_6 = arith.constant 0 : index
    %c1 = arith.constant 1 : index
    %c0_7 = arith.constant 0 : index
    %c0_8 = arith.constant 0 : index
    %5 = vector.load %arg1[%c0_6, %c1, %c0_7, %c0_8] : memref<1x2x80x192xbf16, #tpu.memory_space<vmem>>, vector<1x1x64x192xbf16>
    %6 = vector.shape_cast %5 : vector<1x1x64x192xbf16> to vector<64x192xbf16>
    %c1_9 = arith.constant 1 : index
    %c0_10 = arith.constant 0 : index
    %c0_11 = arith.constant 0 : index
    %7 = vector.load %arg2[%c1_9, %c0_10, %c0_11] : memref<3x192x128xbf16, #tpu.memory_space<vmem>>, vector<1x192x128xbf16>
    %8 = vector.shape_cast %7 : vector<1x192x128xbf16> to vector<192x128xbf16>
    %cst_12 = arith.constant dense<0.000000e+00> : vector<64x128xf32>
    %9 = tpu.matmul %6, %8, %cst_12 {dimension_numbers = #tpu.dot_dimension_numbers<[1], [0], [0], [1], [0, 0, 1, 1], [], []>} : vector<64x192xbf16>, vector<192x128xbf16>, vector<64x128xf32> -> vector<64x128xf32>
    %10 = arith.addf %4, %9 : vector<64x128xf32>
    %c0_13 = arith.constant 0 : index
    %c0_14 = arith.constant 0 : index
    %c16 = arith.constant 16 : index
    %c0_15 = arith.constant 0 : index
    %11 = vector.load %arg1[%c0_13, %c0_14, %c16, %c0_15] : memref<1x2x80x192xbf16, #tpu.memory_space<vmem>>, vector<1x1x64x192xbf16>
    %12 = vector.shape_cast %11 : vector<1x1x64x192xbf16> to vector<64x192xbf16>
    %c2 = arith.constant 2 : index
    %c0_16 = arith.constant 0 : index
    %c0_17 = arith.constant 0 : index
    %13 = vector.load %arg2[%c2, %c0_16, %c0_17] : memref<3x192x128xbf16, #tpu.memory_space<vmem>>, vector<1x192x128xbf16>
    %14 = vector.shape_cast %13 : vector<1x192x128xbf16> to vector<192x128xbf16>
    %cst_18 = arith.constant dense<0.000000e+00> : vector<64x128xf32>
    %15 = tpu.matmul %12, %14, %cst_18 {dimension_numbers = #tpu.dot_dimension_numbers<[1], [0], [0], [1], [0, 0, 1, 1], [], []>} : vector<64x192xbf16>, vector<192x128xbf16>, vector<64x128xf32> -> vector<64x128xf32>
    %16 = arith.addf %10, %15 : vector<64x128xf32>
    %cst_19 = arith.constant dense<0.000000e+00> : vector<64xf32>
    %17 = vector.multi_reduction <add>, %16, %cst_19 [1] : vector<64x128xf32> to vector<64xf32>
    %18 = vector.shape_cast %17 : vector<64xf32> to vector<64x1xf32>
    %cst_20 = arith.constant 1.280000e+02 : f32
    %19 = vector.broadcast %cst_20 : f32 to vector<64x1xf32>
    %20 = arith.divf %18, %19 : vector<64x1xf32>
    %21 = vector.broadcast %20 : vector<64x1xf32> to vector<64x128xf32>
    %22 = arith.subf %16, %21 : vector<64x128xf32>
    %23 = arith.mulf %22, %22 : vector<64x128xf32>
    %cst_21 = arith.constant dense<0.000000e+00> : vector<64xf32>
    %24 = vector.multi_reduction <add>, %23, %cst_21 [1] : vector<64x128xf32> to vector<64xf32>
    %25 = vector.shape_cast %24 : vector<64xf32> to vector<64x1xf32>
    %cst_22 = arith.constant 1.280000e+02 : f32
    %26 = vector.broadcast %cst_22 : f32 to vector<64x1xf32>
    %27 = arith.divf %25, %26 : vector<64x1xf32>
    %c0_23 = arith.constant 0 : index
    %c0_24 = arith.constant 0 : index
    %28 = vector.load %arg3[%c0_23, %c0_24] : memref<1x128xf32, #tpu.memory_space<vmem>>, vector<1x128xf32>
    %cst_25 = arith.constant 9.99999974E-6 : f32
    %29 = vector.broadcast %cst_25 : f32 to vector<64x1xf32>
    %30 = arith.addf %27, %29 : vector<64x1xf32>
    %31 = math.rsqrt %30 : vector<64x1xf32>
    %32 = vector.broadcast %28 : vector<1x128xf32> to vector<64x128xf32>
    %33 = vector.broadcast %31 : vector<64x1xf32> to vector<64x128xf32>
    %34 = arith.mulf %32, %33 : vector<64x128xf32>
    %35 = arith.mulf %22, %34 : vector<64x128xf32>
    %c0_26 = arith.constant 0 : index
    %c0_27 = arith.constant 0 : index
    %36 = vector.load %arg4[%c0_26, %c0_27] : memref<1x128xf32, #tpu.memory_space<vmem>>, vector<1x128xf32>
    %37 = vector.broadcast %36 : vector<1x128xf32> to vector<64x128xf32>
    %38 = arith.addf %35, %37 : vector<64x128xf32>
    %c0_28 = arith.constant 0 : index
    %c0_29 = arith.constant 0 : index
    %c0_30 = arith.constant 0 : index
    %39 = vector.load %arg5[%c0_28, %c0_29, %c0_30] : memref<1x64x128xf32, #tpu.memory_space<vmem>>, vector<1x64x128xf32>
    %40 = vector.shape_cast %39 : vector<1x64x128xf32> to vector<64x128xf32>
    %41 = vector.shape_cast %38 : vector<64x128xf32> to vector<1x64x128xf32>
    tpu.vector_store %arg5[%c0_28, %c0_29, %c0_30], %41 {strides = array<i32>} : memref<1x64x128xf32, #tpu.memory_space<vmem>>, vector<1x64x128xf32>,
    return
  }
  func.func @transform_0(%arg0: i32) -> (i32, i32, i32, i32) {
    %c0_i32 = arith.constant 0 : i32
    %c0_i32_0 = arith.constant 0 : i32
    %c0_i32_1 = arith.constant 0 : i32
    %c0_i32_2 = arith.constant 0 : i32
    return %arg0, %c0_i32, %c0_i32_0, %c0_i32_1 : i32, i32, i32, i32
  }
  func.func @transform_1(%arg0: i32) -> (i32, i32, i32) {
    %c0_i32 = arith.constant 0 : i32
    %c0_i32_0 = arith.constant 0 : i32
    %c0_i32_1 = arith.constant 0 : i32
    %c0_i32_2 = arith.constant 0 : i32
    return %c0_i32, %c0_i32_0, %c0_i32_1 : i32, i32, i32
  }
  func.func @transform_2(%arg0: i32) -> (i32, i32) {
    %c0_i32 = arith.constant 0 : i32
    %c0_i32_0 = arith.constant 0 : i32
    %c0_i32_1 = arith.constant 0 : i32
    return %c0_i32, %c0_i32_0 : i32, i32
  }
  func.func @transform_3(%arg0: i32) -> (i32, i32) {
    %c0_i32 = arith.constant 0 : i32
    %c0_i32_0 = arith.constant 0 : i32
    %c0_i32_1 = arith.constant 0 : i32
    return %c0_i32, %c0_i32_0 : i32, i32
  }
  func.func @transform_4(%arg0: i32) -> (i32, i32, i32) {
    %c0_i32 = arith.constant 0 : i32
    %c0_i32_0 = arith.constant 0 : i32
    %c0_i32_1 = arith.constant 0 : i32
    return %arg0, %c0_i32, %c0_i32_0 : i32, i32, i32
  }
}

module attributes {stable_mosaic.version = 11 : i64} {
  func.func @kernel(%arg0: i32, %arg1: memref<1x2x80x192xbf16, #tpu.memory_space<vmem>>, %arg2: memref<3x192x128xbf16, #tpu.memory_space<vmem>>, %arg3: memref<1x128xf32, #tpu.memory_space<vmem>>, %arg4: memref<1x128xf32, #tpu.memory_space<vmem>>, %arg5: memref<1x64x128xf32, #tpu.memory_space<vmem>>) attributes {dimension_semantics = [#tpu.dimension_semantics<parallel>], iteration_bounds = array<i64: 4>, scalar_prefetch = 0 : i64, scratch_operands = 0 : i64, tpu.core_type = #tpu.core_type<tc>, window_params = [{transform_indices = @transform_0, window_bounds = array<i64: 1, 2, 80, 192>}, {pipeline_mode = #tpu.pipeline_mode<synchronous>, transform_indices = @transform_1, window_bounds = array<i64: 3, 192, 128>}, {pipeline_mode = #tpu.pipeline_mode<synchronous>, transform_indices = @transform_2, window_bounds = array<i64: 1, 128>}, {pipeline_mode = #tpu.pipeline_mode<synchronous>, transform_indices = @transform_3, window_bounds = array<i64: 1, 128>}, {transform_indices = @transform_4, window_bounds = array<i64: 1, 64, 128>}]} {
    %c0 = arith.constant 0 : index
    %c0_0 = arith.constant 0 : index
    %c0_1 = arith.constant 0 : index
    %c0_2 = arith.constant 0 : index
    %0 = vector.load %arg1[%c0, %c0_0, %c0_1, %c0_2] : memref<1x2x80x192xbf16, #tpu.memory_space<vmem>>, vector<1x1x64x192xbf16>
    %1 = vector.shape_cast %0 : vector<1x1x64x192xbf16> to vector<64x192xbf16>
    %c0_3 = arith.constant 0 : index
    %c0_4 = arith.constant 0 : index
    %c0_5 = arith.constant 0 : index
    %2 = vector.load %arg2[%c0_3, %c0_4, %c0_5] : memref<3x192x128xbf16, #tpu.memory_space<vmem>>, vector<1x192x128xbf16>
    %3 = vector.shape_cast %2 : vector<1x192x128xbf16> to vector<192x128xbf16>
    %cst = arith.constant dense<0.000000e+00> : vector<64x128xf32>
    %4 = tpu.matmul %1, %3, %cst {dimension_numbers = #tpu.dot_dimension_numbers<[1], [0], [0], [1], [0, 0, 1, 1], [], []>} : vector<64x192xbf16>, vector<192x128xbf16>, vector<64x128xf32> -> vector<64x128xf32>
    %c0_6 = arith.constant 0 : index
    %c1 = arith.constant 1 : index
    %c0_7 = arith.constant 0 : index
    %c0_8 = arith.constant 0 : index
    %5 = vector.load %arg1[%c0_6, %c1, %c0_7, %c0_8] : memref<1x2x80x192xbf16, #tpu.memory_space<vmem>>, vector<1x1x64x192xbf16>
    %6 = vector.shape_cast %5 : vector<1x1x64x192xbf16> to vector<64x192xbf16>
    %c1_9 = arith.constant 1 : index
    %c0_10 = arith.constant 0 : index
    %c0_11 = arith.constant 0 : index
    %7 = vector.load %arg2[%c1_9, %c0_10, %c0_11] : memref<3x192x128xbf16, #tpu.memory_space<vmem>>, vector<1x192x128xbf16>
    %8 = vector.shape_cast %7 : vector<1x192x128xbf16> to vector<192x128xbf16>
    %cst_12 = arith.constant dense<0.000000e+00> : vector<64x128xf32>
    %9 = tpu.matmul %6, %8, %cst_12 {dimension_numbers = #tpu.dot_dimension_numbers<[1], [0], [0], [1], [0, 0, 1, 1], [], []>} : vector<64x192xbf16>, vector<192x128xbf16>, vector<64x128xf32> -> vector<64x128xf32>
    %10 = arith.addf %4, %9 : vector<64x128xf32>
    %c0_13 = arith.constant 0 : index
    %c0_14 = arith.constant 0 : index
    %c16 = arith.constant 16 : index
    %c0_15 = arith.constant 0 : index
    %11 = vector.load %arg1[%c0_13, %c0_14, %c16, %c0_15] : memref<1x2x80x192xbf16, #tpu.memory_space<vmem>>, vector<1x1x64x192xbf16>
    %12 = vector.shape_cast %11 : vector<1x1x64x192xbf16> to vector<64x192xbf16>
    %c2 = arith.constant 2 : index
    %c0_16 = arith.constant 0 : index
    %c0_17 = arith.constant 0 : index
    %13 = vector.load %arg2[%c2, %c0_16, %c0_17] : memref<3x192x128xbf16, #tpu.memory_space<vmem>>, vector<1x192x128xbf16>
    %14 = vector.shape_cast %13 : vector<1x192x128xbf16> to vector<192x128xbf16>
    %cst_18 = arith.constant dense<0.000000e+00> : vector<64x128xf32>
    %15 = tpu.matmul %12, %14, %cst_18 {dimension_numbers = #tpu.dot_dimension_numbers<[1], [0], [0], [1], [0, 0, 1, 1], [], []>} : vector<64x192xbf16>, vector<192x128xbf16>, vector<64x128xf32> -> vector<64x128xf32>
    %16 = arith.addf %10, %15 : vector<64x128xf32>
    %cst_19 = arith.constant dense<0.000000e+00> : vector<64xf32>
    %17 = vector.multi_reduction <add>, %16, %cst_19 [1] : vector<64x128xf32> to vector<64xf32>
    %18 = vector.shape_cast %17 : vector<64xf32> to vector<64x1xf32>
    %cst_20 = arith.constant 1.280000e+02 : f32
    %19 = vector.broadcast %cst_20 : f32 to vector<64x1xf32>
    %20 = arith.divf %18, %19 : vector<64x1xf32>
    %21 = vector.broadcast %20 : vector<64x1xf32> to vector<64x128xf32>
    %22 = arith.subf %16, %21 : vector<64x128xf32>
    %23 = arith.mulf %22, %22 : vector<64x128xf32>
    %cst_21 = arith.constant dense<0.000000e+00> : vector<64xf32>
    %24 = vector.multi_reduction <add>, %23, %cst_21 [1] : vector<64x128xf32> to vector<64xf32>
    %25 = vector.shape_cast %24 : vector<64xf32> to vector<64x1xf32>
    %cst_22 = arith.constant 1.280000e+02 : f32
    %26 = vector.broadcast %cst_22 : f32 to vector<64x1xf32>
    %27 = arith.divf %25, %26 : vector<64x1xf32>
    %c0_23 = arith.constant 0 : index
    %c0_24 = arith.constant 0 : index
    %28 = vector.load %arg3[%c0_23, %c0_24] : memref<1x128xf32, #tpu.memory_space<vmem>>, vector<1x128xf32>
    %cst_25 = arith.constant 9.99999974E-6 : f32
    %29 = vector.broadcast %cst_25 : f32 to vector<64x1xf32>
    %30 = arith.addf %27, %29 : vector<64x1xf32>
    %31 = math.rsqrt %30 : vector<64x1xf32>
    %32 = vector.broadcast %28 : vector<1x128xf32> to vector<64x128xf32>
    %33 = vector.broadcast %31 : vector<64x1xf32> to vector<64x128xf32>
    %34 = arith.mulf %32, %33 : vector<64x128xf32>
    %35 = arith.mulf %22, %34 : vector<64x128xf32>
    %c0_26 = arith.constant 0 : index
    %c0_27 = arith.constant 0 : index
    %36 = vector.load %arg4[%c0_26, %c0_27] : memref<1x128xf32, #tpu.memory_space<vmem>>, vector<1x128xf32>
    %37 = vector.broadcast %36 : vector<1x128xf32> to vector<64x128xf32>
    %38 = arith.addf %35, %37 : vector<64x128xf32>
    %c0_28 = arith.constant 0 : index
    %c0_29 = arith.constant 0 : index
    %c0_30 = arith.constant 0 : index
    %39 = vector.load %arg5[%c0_28, %c0_29, %c0_30] : memref<1x64x128xf32, #tpu.memory_space<vmem>>, vector<1x64x128xf32>
    %40 = vector.shape_cast %39 : vector<1x64x128xf32> to vector<64x128xf32>
    %41 = vector.shape_cast %38 : vector<64x128xf32> to vector<1x64x128xf32>
    tpu.vector_store %arg5[%c0_28, %c0_29, %c0_30], %41 {strides = array<i32>} : memref<1x64x128xf32, #tpu.memory_space<vmem>>, vector<1x64x128xf32>,
    return
  }
  func.func @transform_0(%arg0: i32) -> (i32, i32, i32, i32) {
    %c0_i32 = arith.constant 0 : i32
    %c0_i32_0 = arith.constant 0 : i32
    %c0_i32_1 = arith.constant 0 : i32
    %c0_i32_2 = arith.constant 0 : i32
    return %arg0, %c0_i32, %c0_i32_0, %c0_i32_1 : i32, i32, i32, i32
  }
  func.func @transform_1(%arg0: i32) -> (i32, i32, i32) {
    %c0_i32 = arith.constant 0 : i32
    %c0_i32_0 = arith.constant 0 : i32
    %c0_i32_1 = arith.constant 0 : i32
    %c0_i32_2 = arith.constant 0 : i32
    return %c0_i32, %c0_i32_0, %c0_i32_1 : i32, i32, i32
  }
  func.func @transform_2(%arg0: i32) -> (i32, i32) {
    %c0_i32 = arith.constant 0 : i32
    %c0_i32_0 = arith.constant 0 : i32
    %c0_i32_1 = arith.constant 0 : i32
    return %c0_i32, %c0_i32_0 : i32, i32
  }
  func.func @transform_3(%arg0: i32) -> (i32, i32) {
    %c0_i32 = arith.constant 0 : i32
    %c0_i32_0 = arith.constant 0 : i32
    %c0_i32_1 = arith.constant 0 : i32
    return %c0_i32, %c0_i32_0 : i32, i32
  }
  func.func @transform_4(%arg0: i32) -> (i32, i32, i32) {
    %c0_i32 = arith.constant 0 : i32
    %c0_i32_0 = arith.constant 0 : i32
    %c0_i32_1 = arith.constant 0 : i32
    return %arg0, %c0_i32, %c0_i32_0 : i32, i32, i32
  }
}

</mosaic_0001>

<bundles_post_ra>
// kernel: conv_downsampler.1
= control target key start
LH: loop header
LB: loop body
LE: loop exit
PB: predicated region body
PF: predicated region fallthrough
CT: control target
= control target key end

     0   :  { %s1352_s15 = smov 0   ;;  %s1629_s0 = inlined_call_operand.vmem [shape: bf16[4,2,80,192], index: 0, kind: input, shape index: {}]   ;;  %s1630_s1 = inlined_call_operand.vmem [shape: bf16[3,192,128], index: 1, kind: input, shape index: {}]   ;;  %s1631_s2 = inlined_call_operand.vmem [shape: f32[1,128], index: 2, kind: input, shape index: {}]   ;;  %s1632_s3 = inlined_call_operand.vmem [shape: f32[1,128], index: 3, kind: input, shape index: {}]   ;;  %s1633_s4 = inlined_call_operand.vmem [shape: f32[4,64,128], index: 4, kind: output, shape index: {}]  }
   0x1 LB: > { %s1044_s16 = sadd.s32 4294967295, %s1324_s15   ;;  %p1048_p0 = scmp.ge.s32.totalorder %s1324_s15, 1  ;;  %s1324_s15 = sphi %s1352_s15, %s14_s15  }
   0x2   : > { %p162_p1 = scmp.lt.s32.totalorder %s1324_s15, 5 }
   0x4   : > { %p163_p2 = pnand %p1048_p0, %p162_p1 }
   0x5   : > { %v1239_v0 = vld [vmem:[%s1630_s1 + $0x60] sm:$0xff] (!%p163_p2)   ;;  %v1326_v1 = vmov (!%p163_p2), 0   ;;  %v1241_v3 = vld [vmem:[%s1630_s1 + $0x68] sm:$0xff] (!%p163_p2)   ;;  %v1243_v5 = vld [vmem:[%s1630_s1 + $0x70] sm:$0xff] (!%p163_p2)   ;;  %p188_p3 = scmp.lt.s32.totalorder (!%p163_p2), %s1044_s16, 3  ;;  %vm373_vm0 = vcmask (!%p163_p2), 523264  }
   0x6   : > { %166 = sbr.rel (%p163_p2) target bundleno = 648 (0x288), region = 36  ;;  %386 = vmatprep.subr.bf16.mxu1 (!%p163_p2), %v1326_v1  ;;  %571 = vmatprep.subr.bf16.mxu0 (!%p163_p2), %v1326_v1  ;;  %v1240_v2 = vld [vmem:[%s1630_s1] sm:$0xff] (!%p163_p2)   ;;  %v1242_v4 = vld [vmem:[%s1630_s1 + $0x8] sm:$0xff] (!%p163_p2)   ;;  %v1244_v6 = vld [vmem:[%s1630_s1 + $0x10] sm:$0xff] (!%p163_p2)  }
   0x7   : > { %387 = vmatpush1.bf16.msra.mxu1 (!%p163_p2), %v1239_v0  ;;  %572 = vmatpush1.bf16.msra.mxu0 (!%p163_p2), %v1240_v2  ;;  %v1245_v7 = vld [vmem:[%s1630_s1 + $0x78] sm:$0xff] (!%p163_p2)   ;;  %v1247_v9 = vld [vmem:[%s1630_s1 + $0x80] sm:$0xff] (!%p163_p2)   ;;  %v1249_v11 = vld [vmem:[%s1630_s1 + $0x88] sm:$0xff] (!%p163_p2)  }
   0x8   : > { %388 = vmatprep.subr.bf16.mxu1 (!%p163_p2), %v1326_v1  ;;  %573 = vmatprep.subr.bf16.mxu0 (!%p163_p2), %v1326_v1  ;;  %v1246_v8 = vld [vmem:[%s1630_s1 + $0x18] sm:$0xff] (!%p163_p2)   ;;  %v1248_v10 = vld [vmem:[%s1630_s1 + $0x20] sm:$0xff] (!%p163_p2)   ;;  %v1250_v12 = vld [vmem:[%s1630_s1 + $0x28] sm:$0xff] (!%p163_p2)  }
   0x9   : > { %v1251_v13 = vld [vmem:[%s1630_s1 + $0x90] sm:$0xff] (!%p163_p2)   ;;  %v1253_v16 = vld [vmem:[%s1630_s1 + $0x98] sm:$0xff] (!%p163_p2)   ;;  %v1255_v19 = vld [vmem:[%s1630_s1 + $0xa0] sm:$0xff] (!%p163_p2)  }
   0xa   : > { %v1252_v14 = vld [vmem:[%s1630_s1 + $0x30] sm:$0xff] (!%p163_p2)   ;;  %v1254_v18 = vld [vmem:[%s1630_s1 + $0x38] sm:$0xff] (!%p163_p2)   ;;  %v1256_v20 = vld [vmem:[%s1630_s1 + $0x40] sm:$0xff] (!%p163_p2)  }
   0xb   : > { %389 = vmatpush1.bf16.msra.mxu1 (!%p163_p2), %v1241_v3  ;;  %574 = vmatpush1.bf16.msra.mxu0 (!%p163_p2), %v1242_v4  ;;  %v1257_v21 = vld [vmem:[%s1630_s1 + $0xa8] sm:$0xff] (!%p163_p2)   ;;  %v1259_v23 = vld [vmem:[%s1630_s1 + $0xb0] sm:$0xff] (!%p163_p2)   ;;  %v1261_v25 = vld [vmem:[%s1630_s1 + $0xb8] sm:$0xff] (!%p163_p2)  }
   0xc   : > { %390 = vmatprep.subr.bf16.mxu1 (!%p163_p2), %v1326_v1  ;;  %575 = vmatprep.subr.bf16.mxu0 (!%p163_p2), %v1326_v1  ;;  %v1258_v22 = vld [vmem:[%s1630_s1 + $0x48] sm:$0xff] (!%p163_p2)   ;;  %v1260_v24 = vld [vmem:[%s1630_s1 + $0x50] sm:$0xff] (!%p163_p2)   ;;  %v1262_v26 = vld [vmem:[%s1630_s1 + $0x58] sm:$0xff] (!%p163_p2)  }
   0xd   : > { %s1635_s16 = smov (!%p188_p3, %s1044_s16), 3  ;;  %v1269_v29 = vld [vmem:[%s1630_s1 + $0xc0] sm:$0xff]   ;;  %v1270_v32 = vld [vmem:[%s1630_s1 + $0xc8] sm:$0xff]   ;;  %v1271_v34 = vld [vmem:[%s1630_s1 + $0xd0] sm:$0xff]  }
   0xe   : > { %s1229_s13 = smul.u32 160, %s1635_s16  ;;  %v1272_v38 = vld [vmem:[%s1630_s1 + $0xd8] sm:$0xff]   ;;  %v1273_v40 = vld [vmem:[%s1630_s1 + $0xe0] sm:$0xff]   ;;  %v1279_v44 = vld [vmem:[%s1630_s1 + $0xe8] sm:$0xff]   ;;  %s1184_s24 = sshll.u32 %s1635_s16, 6 }
   0xf   : > { %391 = vmatpush1.bf16.msra.mxu1 %v1243_v5  ;;  %576 = vmatpush1.bf16.msra.mxu0 %v1244_v6  ;;  %v1281_v46 = vld [vmem:[%s1630_s1 + $0xf0] sm:$0xff]   ;;  %v1287_v48 = vld [vmem:[%s1630_s1 + $0xf8] sm:$0xff]   ;;  %v1289_v49 = vld [vmem:[%s1630_s1 + $0x100] sm:$0xff]   ;;  %s1609_s29 = scalar_lea.vmem %s1633_s4, %s1184_s24 }
  0x10   : > { %392 = vmatprep.subr.bf16.mxu1 %v1326_v1  ;;  %577 = vmatprep.subr.bf16.mxu0 %v1326_v1  ;;  %s1421_s22 = scalar_lea.vmem %s1629_s0, %s1229_s13  ;;  %v1295_v50 = vld [vmem:[%s1630_s1 + $0x108] sm:$0xff]   ;;  %v1297_v51 = vld [vmem:[%s1630_s1 + $0x110] sm:$0xff]   ;;  %v1298_v52 = vld [vmem:[%s1630_s1 + $0x118] sm:$0xff]  }
  0x11   : > { %v1265_v15 = vld [vmem:[%s1421_s22 + $0x54] ss:$8 sps:$4 sm:$0xff]   ;;  %v1268_v17 = vld [vmem:[%s1421_s22 + $0x4] ss:$8 sps:$4 sm:$0xff]   ;;  %v1263_v27 = vld [vmem:[%s1421_s22 + $0x50] ss:$8 sps:$4 sm:$0xff]  }
  0x12   : > { %1104 = vmatprep.mubr.msk.bf16.mxu1 %vm373_vm0, %v1265_v15  ;;  %1128 = vmatprep.mubr.msk.bf16.mxu0 %vm373_vm0, %v1268_v17  ;;  %v1266_v28 = vld [vmem:[%s1421_s22] ss:$8 sps:$4 sm:$0xff]   ;;  %v1274_v30 = vld [vmem:[%s1421_s22 + $0x14] ss:$8 sps:$4 sm:$0xff]   ;;  %v1276_v31 = vld [vmem:[%s1421_s22 + $0x64] ss:$8 sps:$4 sm:$0xff]  }
  0x13   : > { %393 = vmatpush1.bf16.msra.mxu1 %v1245_v7  ;;  %578 = vmatpush1.bf16.msra.mxu0 %v1246_v8  ;;  %v1280_v33 = vld [vmem:[%s1421_s22 + $0x60] ss:$8 sps:$4 sm:$0xff]   ;;  %v1493_v35 = vld [vmem:[%s1421_s22 + $0x10] ss:$8 sps:$4 sm:$0xff]   ;;  %v1498_v36 = vld [vmem:[%s1421_s22 + $0x24] ss:$8 sps:$4 sm:$0xff]  }
  0x14   : > { %394 = vmatprep.subr.bf16.mxu1 %v1326_v1  ;;  %579 = vmatprep.subr.bf16.mxu0 %v1326_v1  ;;  %v1284_v37 = vld [vmem:[%s1421_s22 + $0x74] ss:$8 sps:$4 sm:$0xff]   ;;  %v1288_v39 = vld [vmem:[%s1421_s22 + $0x70] ss:$8 sps:$4 sm:$0xff]   ;;  %v1286_v41 = vld [vmem:[%s1421_s22 + $0x20] ss:$8 sps:$4 sm:$0xff]  }
  0x15   : > { %v1290_v42 = vld [vmem:[%s1421_s22 + $0x34] ss:$8 sps:$4 sm:$0xff]   ;;  %v1292_v43 = vld [vmem:[%s1421_s22 + $0x84] ss:$8 sps:$4 sm:$0xff]   ;;  %v1296_v45 = vld [vmem:[%s1421_s22 + $0x80] ss:$8 sps:$4 sm:$0xff]  }
  0x16   : > { %v1294_v47 = vld [vmem:[%s1421_s22 + $0x30] ss:$8 sps:$4 sm:$0xff]   ;;  %v1299_v53 = vld [vmem:[%s1421_s22 + $0x44] ss:$8 sps:$4 sm:$0xff]   ;;  %v1301_v54 = vld [vmem:[%s1421_s22 + $0x40] ss:$8 sps:$4 sm:$0xff]  }
  0x17   : > { %395 = vmatpush1.bf16.msra.mxu1 %v1247_v9  ;;  %580 = vmatpush1.bf16.msra.mxu0 %v1248_v10 }
  0x18   : > { %396 = vmatprep.subr.bf16.mxu1 %v1326_v1  ;;  %581 = vmatprep.subr.bf16.mxu0 %v1326_v1 }
  0x1b   : > { %397 = vmatpush1.bf16.msra.mxu1 %v1249_v11  ;;  %582 = vmatpush1.bf16.msra.mxu0 %v1250_v12 }
  0x1c   : > { %398 = vmatprep.subr.bf16.mxu1 %v1326_v1  ;;  %583 = vmatprep.subr.bf16.mxu0 %v1326_v1 }
  0x1f   : > { %399 = vmatpush1.bf16.msra.mxu1 %v1251_v13  ;;  %584 = vmatpush1.bf16.msra.mxu0 %v1252_v14 }
  0x20   : > { %400 = vmatprep.subr.bf16.mxu1 %v1326_v1  ;;  %585 = vmatprep.subr.bf16.mxu0 %v1326_v1 }
  0x23   : > { %401 = vmatpush1.bf16.msra.mxu1 %v1253_v16  ;;  %586 = vmatpush1.bf16.msra.mxu0 %v1254_v18 }
  0x24   : > { %402 = vmatprep.subr.bf16.mxu1 %v1326_v1  ;;  %587 = vmatprep.subr.bf16.mxu0 %v1326_v1 }
  0x27   : > { %403 = vmatpush1.bf16.msra.mxu1 %v1255_v19  ;;  %588 = vmatpush1.bf16.msra.mxu0 %v1256_v20 }
  0x28   : > { %404 = vmatprep.subr.bf16.mxu1 %v1326_v1  ;;  %589 = vmatprep.subr.bf16.mxu0 %v1326_v1 }
  0x2b   : > { %405 = vmatpush1.bf16.msra.mxu1 %v1257_v21  ;;  %590 = vmatpush1.bf16.msra.mxu0 %v1258_v22 }
  0x2c   : > { %406 = vmatprep.subr.bf16.mxu1 %v1326_v1  ;;  %591 = vmatprep.subr.bf16.mxu0 %v1326_v1 }
  0x2f   : > { %407 = vmatpush1.bf16.msra.mxu1 %v1259_v23  ;;  %592 = vmatpush1.bf16.msra.mxu0 %v1260_v24 }
  0x30   : > { %408 = vmatprep.subr.bf16.mxu1 %v1326_v1  ;;  %593 = vmatprep.subr.bf16.mxu0 %v1326_v1 }
  0x33   : > { %409 = vmatpush1.bf16.msra.mxu1 %v1261_v25  ;;  %594 = vmatpush1.bf16.msra.mxu0 %v1262_v26 }
  0x34   : > { %1185 = vmatprep.subr.bf16.mxu1 %v1326_v1  ;;  %789 = vmatprep.subr.bf16.mxu0 %v1326_v1 }
  0x36   : > { %419 = vmatmul.mubr.bf16.vlgmr.msra.gmra.mrb[0].mxu1 %v1263_v27  ;;  %604 = vmatmul.mubr.bf16.vlgmr.msra.gmra.mrb[0].mxu0 %v1266_v28 }
  0x37   : > { %1197 = vmatpush1.bf16.msra.mxu1 %v1269_v29  ;;  %790 = vmatpush1.bf16.msra.mxu0 %v1269_v29 }
  0x38   : > { %1186 = vmatprep.subr.bf16.mxu1 %v1326_v1  ;;  %791 = vmatprep.subr.bf16.mxu0 %v1326_v1 }
  0x39   : > { %1129 = vmatprep.mubr.msk.bf16.mxu0 %vm373_vm0, %v1274_v30  ;;  %1105 = vmatprep.mubr.msk.bf16.mxu1 %vm373_vm0, %v1276_v31 }
  0x3b   : > { %1198 = vmatpush1.bf16.msra.mxu1 %v1270_v32  ;;  %792 = vmatpush1.bf16.msra.mxu0 %v1270_v32 }
  0x3c   : > { %1187 = vmatprep.subr.bf16.mxu1 %v1326_v1  ;;  %793 = vmatprep.subr.bf16.mxu0 %v1326_v1 }
  0x3e   : > { %427 = vmatmul.mubr.bf16.gmra.mrb[4].mxu1 %v1280_v33  ;;  %612 = vmatmul.mubr.bf16.gmra.mrb[4].mxu0 %v1493_v35 }
  0x3f   : > { %1199 = vmatpush1.bf16.msra.mxu1 %v1271_v34  ;;  %794 = vmatpush1.bf16.msra.mxu0 %v1271_v34 }
  0x40   : > { %1188 = vmatprep.subr.bf16.mxu1 %v1326_v1  ;;  %795 = vmatprep.subr.bf16.mxu0 %v1326_v1 }
  0x41   : > { %1130 = vmatprep.mubr.msk.bf16.mxu0 %vm373_vm0, %v1498_v36  ;;  %1106 = vmatprep.mubr.msk.bf16.mxu1 %vm373_vm0, %v1284_v37 }
  0x43   : > { %1200 = vmatpush1.bf16.msra.mxu1 %v1272_v38  ;;  %796 = vmatpush1.bf16.msra.mxu0 %v1272_v38 }
  0x44   : > { %1189 = vmatprep.subr.bf16.mxu1 %v1326_v1  ;;  %797 = vmatprep.subr.bf16.mxu0 %v1326_v1 }
  0x46   : > { %435 = vmatmul.mubr.bf16.gmra.mrb[8].mxu1 %v1288_v39  ;;  %620 = vmatmul.mubr.bf16.gmra.mrb[8].mxu0 %v1286_v41 }
  0x47   : > { %1201 = vmatpush1.bf16.msra.mxu1 %v1273_v40  ;;  %798 = vmatpush1.bf16.msra.mxu0 %v1273_v40 }
  0x48   : > { %1190 = vmatprep.subr.bf16.mxu1 %v1326_v1  ;;  %799 = vmatprep.subr.bf16.mxu0 %v1326_v1 }
  0x49   : > { %1131 = vmatprep.mubr.msk.bf16.mxu0 %vm373_vm0, %v1290_v42  ;;  %1107 = vmatprep.mubr.msk.bf16.mxu1 %vm373_vm0, %v1292_v43 }
  0x4b   : > { %1202 = vmatpush1.bf16.msra.mxu1 %v1279_v44  ;;  %800 = vmatpush1.bf16.msra.mxu0 %v1279_v44 }
  0x4c   : > { %1191 = vmatprep.subr.bf16.mxu1 %v1326_v1  ;;  %801 = vmatprep.subr.bf16.mxu0 %v1326_v1 }
  0x4e   : > { %443 = vmatmul.mubr.bf16.gmra.mrb[12].mxu1 %v1296_v45  ;;  %628 = vmatmul.mubr.bf16.gmra.mrb[12].mxu0 %v1294_v47 }
  0x4f   : > { %1203 = vmatpush1.bf16.msra.mxu1 %v1281_v46  ;;  %802 = vmatpush1.bf16.msra.mxu0 %v1281_v46 }
  0x50   : > { %1192 = vmatprep.subr.bf16.mxu1 %v1326_v1  ;;  %803 = vmatprep.subr.bf16.mxu0 %v1326_v1 }
  0x51   : > { %1176 = vmatprep.mubr.msk.bf16.mxu0 %vm373_vm0, %v1274_v30  ;;  %1178 = vmatprep.mubr.msk.bf16.mxu1 %vm373_vm0, %v1290_v42 }
  0x53   : > { %1204 = vmatpush1.bf16.msra.mxu1 %v1287_v48  ;;  %804 = vmatpush1.bf16.msra.mxu0 %v1287_v48 }
  0x54   : > { %1193 = vmatprep.subr.bf16.mxu1 %v1326_v1  ;;  %805 = vmatprep.subr.bf16.mxu0 %v1326_v1 }
  0x57   : > { %1205 = vmatpush1.bf16.msra.mxu1 %v1289_v49  ;;  %806 = vmatpush1.bf16.msra.mxu0 %v1289_v49 }
  0x58   : > { %1194 = vmatprep.subr.bf16.mxu1 %v1326_v1  ;;  %807 = vmatprep.subr.bf16.mxu0 %v1326_v1 }
  0x5b   : > { %1206 = vmatpush1.bf16.msra.mxu1 %v1295_v50  ;;  %808 = vmatpush1.bf16.msra.mxu0 %v1295_v50 }
  0x5c   : > { %1195 = vmatprep.subr.bf16.mxu1 %v1326_v1  ;;  %809 = vmatprep.subr.bf16.mxu0 %v1326_v1 }
  0x5f   : > { %1207 = vmatpush1.bf16.msra.mxu1 %v1297_v51  ;;  %810 = vmatpush1.bf16.msra.mxu0 %v1297_v51 }
  0x60   : > { %1196 = vmatprep.subr.bf16.mxu1 %v1326_v1  ;;  %811 = vmatprep.subr.bf16.mxu0 %v1326_v1 }
  0x63   : > { %1208 = vmatpush1.bf16.msra.mxu1 %v1298_v52  ;;  %812 = vmatpush1.bf16.msra.mxu0 %v1298_v52 }
  0x66   : > { %838 = vmatmul.mubr.bf16.vlgmr.msra.gmra.mrb[16].mxu1 %v1294_v47  ;;  %822 = vmatmul.mubr.bf16.vlgmr.msra.gmra.mrb[0].mxu0 %v1493_v35 }
  0x67   : > { %1179 = vmatprep.mubr.msk.bf16.mxu1 %vm373_vm0, %v1299_v53  ;;  %1177 = vmatprep.mubr.msk.bf16.mxu0 %vm373_vm0, %v1498_v36 }
  0x6e   : > { %846 = vmatmul.mubr.bf16.gmra.mrb[20].mxu1 %v1301_v54  ;;  %830 = vmatmul.mubr.bf16.gmra.mrb[4].mxu0 %v1286_v41 }
 0x109   : > { %v420_v55 = vpop.f32.mrb[0].mxu1 }
 0x10a   : > { %v422_v56 = vpop.f32.mrb[1].mxu1 }
 0x10b   : > { %v423_v57 = vpop.f32.mrb[2].mxu1 }
 0x10c   : > { %v425_v58 = vpop.f32.mrb[3].mxu1 }
 0x111   : > { %v428_v59 = vpop.f32.mrb[4].mxu1 }
 0x112   : > { %v430_v60 = vpop.f32.mrb[5].mxu1 }
 0x113   : > { %v431_v61 = vpop.f32.mrb[6].mxu1 }
 0x114   : > { %v433_v62 = vpop.f32.mrb[7].mxu1 }
 0x119   : > { %v436_v63 = vpop.f32.mrb[8].mxu1  ;;  %v621_v0 = vpop.f32.mrb[8].mxu0 }
 0x11a   : > { %v438_v1 = vpop.f32.mrb[9].mxu1  ;;  %v622_v2 = vadd.f32 %v621_v0, %v436_v63  ;;  %v623_v3 = vpop.f32.mrb[9].mxu0 }
 0x11b   : > { %v439_v4 = vpop.f32.mrb[10].mxu1  ;;  %v624_v5 = vpop.f32.mrb[10].mxu0 }
 0x11c   : > { %v441_v6 = vpop.f32.mrb[11].mxu1  ;;  %v625_v7 = vadd.f32 %v624_v5, %v439_v4  ;;  %v626_v8 = vpop.f32.mrb[11].mxu0 }
 0x121   : > { %v444_v9 = vpop.f32.mrb[12].mxu1  ;;  %v629_v10 = vpop.f32.mrb[12].mxu0 }
 0x122   : > { %v446_v11 = vpop.f32.mrb[13].mxu1  ;;  %v630_v12 = vadd.f32 %v629_v10, %v444_v9  ;;  %v631_v13 = vpop.f32.mrb[13].mxu0 }
 0x123   : > { %v447_v14 = vpop.f32.mrb[14].mxu1  ;;  %v632_v15 = vpop.f32.mrb[14].mxu0 }
 0x124   : > { %v449_v16 = vpop.f32.mrb[15].mxu1  ;;  %v633_v17 = vadd.f32 %v632_v15, %v447_v14  ;;  %v634_v18 = vpop.f32.mrb[15].mxu0 }
 0x139   : > { %v839_v19 = vpop.f32.mrb[16].mxu1  ;;  %v823_v20 = vpop.f32.mrb[0].mxu0 }
 0x13a   : > { %v858_v21 = vadd.f32 %v839_v19, %v622_v2  ;;  %v841_v22 = vpop.f32.mrb[17].mxu1  ;;  %v1209_v23 = vadd.f32 %v823_v20, %v420_v55  ;;  %v825_v24 = vpop.f32.mrb[1].mxu0 }
 0x13b   : > { %v842_v25 = vpop.f32.mrb[18].mxu1  ;;  %v826_v26 = vpop.f32.mrb[2].mxu0 }
 0x13c   : > { %v859_v27 = vadd.f32 %v842_v25, %v625_v7  ;;  %v844_v28 = vpop.f32.mrb[19].mxu1  ;;  %v1210_v29 = vadd.f32 %v826_v26, %v423_v57  ;;  %862 = vadd.xlane.f32.xlu0 %v1209_v23  ;;  %v828_v30 = vpop.f32.mrb[3].mxu0  ;;  %v1180_v25 = vld [vmem:[%s1631_s2] ss:$0 sm:$0xff] }
 0x13e   : > { %872 = vadd.xlane.f32.xlu1 %v859_v27 }
 0x140   : > { %870 = vadd.xlane.f32.xlu0 %v858_v21 }
 0x141   : > { %v847_v31 = vpop.f32.mrb[20].mxu1  ;;  %v831_v32 = vpop.f32.mrb[4].mxu0 }
 0x142   : > { %v860_v33 = vadd.f32 %v847_v31, %v630_v12  ;;  %v849_v34 = vpop.f32.mrb[21].mxu1  ;;  %v1211_v35 = vadd.f32 %v831_v32, %v428_v59  ;;  %v833_v36 = vpop.f32.mrb[5].mxu0 }
 0x143   : > { %v850_v37 = vpop.f32.mrb[22].mxu1  ;;  %v834_v38 = vpop.f32.mrb[6].mxu0 }
 0x144   : > { %v861_v39 = vadd.f32 %v850_v37, %v633_v17  ;;  %v852_v40 = vpop.f32.mrb[23].mxu1  ;;  %v1212_v41 = vadd.f32 %v834_v38, %v431_v61  ;;  %v836_v42 = vpop.f32.mrb[7].mxu0  ;;  %866 = vadd.xlane.f32.xlu1 %v1211_v35  ;;  %864 = vadd.xlane.f32.xlu0 %v1210_v29 }
 0x148   : > { %868 = vadd.xlane.f32.xlu1 %v1212_v41  ;;  %874 = vadd.xlane.f32.xlu0 %v860_v33 }
 0x14c   : > { %876 = vadd.xlane.f32.xlu1 %v861_v39 }
 0x1c9   : > { %v863_v43 = vpop.xlane.xlu0 %862 }
 0x1ca   : > { %v879_v44 = vmul.f32 0.0078125, %v863_v43 }
 0x1cb   : > { %v873_v46 = vpop.xlane.xlu1 %872 }
 0x1cc   : > { %v1566_v45 = vsub.f32 %v1209_v23, %v879_v44  ;;  %v884_v51 = vmul.f32 0.0078125, %v873_v46 }
 0x1cd   : > { %v871_v47 = vpop.xlane.xlu0 %870 }
 0x1ce   : > { %v883_v48 = vmul.f32 0.0078125, %v871_v47  ;;  %v895_v49 = vmul.f32 %v1566_v45, %v1566_v45  ;;  %v1578_v59 = vsub.f32 %v859_v27, %v884_v51 }
 0x1d0   : > { %v1570_v50 = vsub.f32 %v858_v21, %v883_v48  ;;  %903 = vadd.xlane.f32.xlu0 %v895_v49  ;;  %v900_v6 = vmul.f32 %v1578_v59, %v1578_v59 }
 0x1d1   : > { %v867_v52 = vpop.xlane.xlu1 %866  ;;  %v865_v53 = vpop.xlane.xlu0 %864 }
 0x1d2   : > { %v881_v54 = vmul.f32 0.0078125, %v867_v52  ;;  %v880_v55 = vmul.f32 0.0078125, %v865_v53  ;;  %v899_v56 = vmul.f32 %v1570_v50, %v1570_v50 }
 0x1d4   : > { %v1574_v57 = vsub.f32 %v1211_v35, %v881_v54  ;;  %v1576_v58 = vsub.f32 %v1210_v29, %v880_v55  ;;  %911 = vadd.xlane.f32.xlu0 %v899_v56 }
 0x1d5   : > { %v869_v60 = vpop.xlane.xlu1 %868  ;;  %v875_v61 = vpop.xlane.xlu0 %874 }
 0x1d6   : > { %v882_v62 = vmul.f32 0.0078125, %v869_v60  ;;  %v885_v63 = vmul.f32 0.0078125, %v875_v61  ;;  %v897_v0 = vmul.f32 %v1574_v57, %v1574_v57  ;;  %v896_v1 = vmul.f32 %v1576_v58, %v1576_v58 }
 0x1d8   : > { %v1584_v2 = vsub.f32 %v860_v33, %v885_v63  ;;  %907 = vadd.xlane.f32.xlu0 %v897_v0  ;;  %905 = vadd.xlane.f32.xlu1 %v896_v1  ;;  %v1586_v4 = vsub.f32 %v1212_v41, %v882_v62  ;;  %v1181_v33 = vld [vmem:[%s1632_s3] ss:$0 sm:$0xff] }
 0x1d9   : > { %v877_v3 = vpop.xlane.xlu1 %876 }
 0x1da   : > { %v886_v5 = vmul.f32 0.0078125, %v877_v3  ;;  %v901_v7 = vmul.f32 %v1584_v2, %v1584_v2  ;;  %v898_v9 = vmul.f32 %v1586_v4, %v1586_v4 }
 0x1dc   : > { %913 = vadd.xlane.f32.xlu1 %v900_v6  ;;  %915 = vadd.xlane.f32.xlu0 %v901_v7  ;;  %v1592_v8 = vsub.f32 %v861_v39, %v886_v5 }
 0x1de   : > { %v902_v10 = vmul.f32 %v1592_v8, %v1592_v8 }
 0x1e0   : > { %909 = vadd.xlane.f32.xlu1 %v898_v9 }
 0x1e4   : > { %917 = vadd.xlane.f32.xlu1 %v902_v10 }
 0x25d   : > { %v904_v11 = vpop.xlane.xlu0 %903 }
 0x25e   : > { %v919_v12 = vmul.f32 0.0078125, %v904_v11 }
 0x260   : > { %v928_v13 = vadd.f32 1e-05, %v919_v12 }
 0x261   : > { %v912_v14 = vpop.xlane.xlu0 %911 }
 0x262   : > { %1302 = vrsqrt.f32 %v928_v13  ;;  %v923_v15 = vmul.f32 0.0078125, %v912_v14 }
 0x264   : > { %v932_v16 = vadd.f32 1e-05, %v923_v15 }
 0x265   : > { %v906_v17 = vpop.xlane.xlu1 %905  ;;  %v908_v18 = vpop.xlane.xlu0 %907 }
 0x266   : > { %1304 = vrsqrt.f32 %v932_v16  ;;  %v920_v19 = vmul.f32 0.0078125, %v906_v17  ;;  %v921_v20 = vmul.f32 0.0078125, %v908_v18 }
 0x268   : > { %v929_v21 = vadd.f32 1e-05, %v920_v19  ;;  %v930_v22 = vadd.f32 1e-05, %v921_v20 }
 0x269   : > { %v914_v23 = vpop.xlane.xlu1 %913  ;;  %v916_v24 = vpop.xlane.xlu0 %915 }
 0x26a   : > { %1306 = vrsqrt.f32 %v929_v21  ;;  %v924_v26 = vmul.f32 0.0078125, %v914_v23  ;;  %v925_v27 = vmul.f32 0.0078125, %v916_v24 }
 0x26b   : > { %1308 = vrsqrt.f32 %v930_v22 }
 0x26c   : > { %v1303_v28 = vpop.eup %1302  ;;  %v933_v29 = vadd.f32 1e-05, %v924_v26  ;;  %v934_v30 = vadd.f32 1e-05, %v925_v27 }
 0x26d   : > { %v950_v31 = vmul.f32 %v1303_v28, %v1180_v25  ;;  %v910_v32 = vpop.xlane.xlu1 %909 }
 0x26e   : > { %1310 = vrsqrt.f32 %v933_v29  ;;  %v922_v34 = vmul.f32 0.0078125, %v910_v32 }
 0x26f   : > { %v958_v35 = vmul.f32 %v950_v31, %v1566_v45  ;;  %1312 = vrsqrt.f32 %v934_v30 }
 0x270   : > { %v1305_v36 = vpop.eup %1304  ;;  %v931_v37 = vadd.f32 1e-05, %v922_v34 }
 0x271   : > { %v973_v38 = vadd.f32 %v1181_v33, %v958_v35  ;;  %v954_v39 = vmul.f32 %v1305_v36, %v1180_v25  ;;  %v918_v40 = vpop.xlane.xlu1 %917 }
 0x272   : > { %1314 = vrsqrt.f32 %v931_v37  ;;  %v926_v41 = vmul.f32 0.0078125, %v918_v40 }
 0x273   : > { %981 = vst [vmem:[%s1609_s29] sm:$0xff] %v973_v38  ;;  %v962_v42 = vmul.f32 %v954_v39, %v1570_v50 }
 0x274   : > { %v1307_v43 = vpop.eup %1306  ;;  %v935_v44 = vadd.f32 1e-05, %v926_v41 }
 0x275   : > { %v1309_v45 = vpop.eup %1308  ;;  %v977_v46 = vadd.f32 %v1181_v33, %v962_v42  ;;  %v951_v47 = vmul.f32 %v1307_v43, %v1180_v25 }
 0x276   : > { %v952_v48 = vmul.f32 %v1309_v45, %v1180_v25  ;;  %1316 = vrsqrt.f32 %v935_v44 }
 0x277   : > { %985 = vst [vmem:[%s1609_s29 + $0x20] sm:$0xff] %v977_v46  ;;  %v959_v49 = vmul.f32 %v951_v47, %v1576_v58 }
 0x278   : > { %v1311_v51 = vpop.eup %1310  ;;  %v960_v52 = vmul.f32 %v952_v48, %v1574_v57 }
 0x279   : > { %v1313_v53 = vpop.eup %1312  ;;  %v974_v54 = vadd.f32 %v1181_v33, %v959_v49  ;;  %v955_v50 = vmul.f32 %v1311_v51, %v1180_v25 }
 0x27a   : > { %v975_v55 = vadd.f32 %v1181_v33, %v960_v52  ;;  %v956_v56 = vmul.f32 %v1313_v53, %v1180_v25 }
 0x27b   : > { %982 = vst [vmem:[%s1609_s29 + $0x8] sm:$0xff] %v974_v54  ;;  %v963_v60 = vmul.f32 %v955_v50, %v1578_v59 }
 0x27c   : > { %v1315_v61 = vpop.eup %1314  ;;  %983 = vst [vmem:[%s1609_s29 + $0x10] sm:$0xff] %v975_v55  ;;  %v964_v62 = vmul.f32 %v956_v56, %v1584_v2 }
 0x27d   : > { %v978_v58 = vadd.f32 %v1181_v33, %v963_v60  ;;  %v953_v63 = vmul.f32 %v1315_v61, %v1180_v25 }
 0x27e   : > { %v979_v0 = vadd.f32 %v1181_v33, %v964_v62 }
 0x27f   : > { %986 = vst [vmem:[%s1609_s29 + $0x28] sm:$0xff] %v978_v58  ;;  %v961_v57 = vmul.f32 %v953_v63, %v1586_v4 }
 0x280   : > { %v1317_v1 = vpop.eup %1316  ;;  %987 = vst [vmem:[%s1609_s29 + $0x30] sm:$0xff] %v979_v0 }
 0x281   : > { %v976_v3 = vadd.f32 %v1181_v33, %v961_v57  ;;  %v957_v5 = vmul.f32 %v1317_v1, %v1180_v25 }
 0x283   : > { %984 = vst [vmem:[%s1609_s29 + $0x18] sm:$0xff] %v976_v3  ;;  %v965_v6 = vmul.f32 %v957_v5, %v1592_v8 }
 0x285   : > { %v980_v7 = vadd.f32 %v1181_v33, %v965_v6 }
 0x287   : > { %988 = vst [vmem:[%s1609_s29 + $0x38] sm:$0xff] %v980_v7 }
 0x288 PF: > { %s14_s15 = sadd.s32 1, %s1324_s15  }
 0x289   : > { %p11_p4 = scmp.ge.s32.totalorder %s14_s15, 6  }
 0x28b   :  { %13 = sbr.rel (!%p11_p4) target bundleno = 1 (0x1), region = 69 }

// kernel: conv_downsampler.1
= control target key start
LH: loop header
LB: loop body
LE: loop exit
PB: predicated region body
PF: predicated region fallthrough
CT: control target
= control target key end

     0   :  { %s1352_s15 = smov 0   ;;  %s1629_s0 = inlined_call_operand.vmem [shape: bf16[4,2,80,192], index: 0, kind: input, shape index: {}]   ;;  %s1630_s1 = inlined_call_operand.vmem [shape: bf16[3,192,128], index: 1, kind: input, shape index: {}]   ;;  %s1631_s2 = inlined_call_operand.vmem [shape: f32[1,128], index: 2, kind: input, shape index: {}]   ;;  %s1632_s3 = inlined_call_operand.vmem [shape: f32[1,128], index: 3, kind: input, shape index: {}]   ;;  %s1633_s4 = inlined_call_operand.vmem [shape: f32[4,64,128], index: 4, kind: output, shape index: {}]  }
   0x1 LB: > { %s1044_s16 = sadd.s32 4294967295, %s1324_s15   ;;  %p1048_p0 = scmp.ge.s32.totalorder %s1324_s15, 1  ;;  %s1324_s15 = sphi %s1352_s15, %s14_s15  }
   0x2   : > { %p162_p1 = scmp.lt.s32.totalorder %s1324_s15, 5 }
   0x4   : > { %p163_p2 = pnand %p1048_p0, %p162_p1 }
   0x5   : > { %v1239_v0 = vld [vmem:[%s1630_s1 + $0x60] sm:$0xff] (!%p163_p2)   ;;  %v1326_v1 = vmov (!%p163_p2), 0   ;;  %v1241_v3 = vld [vmem:[%s1630_s1 + $0x68] sm:$0xff] (!%p163_p2)   ;;  %v1243_v5 = vld [vmem:[%s1630_s1 + $0x70] sm:$0xff] (!%p163_p2)   ;;  %p188_p3 = scmp.lt.s32.totalorder (!%p163_p2), %s1044_s16, 3  ;;  %vm373_vm0 = vcmask (!%p163_p2), 523264  }
   0x6   : > { %166 = sbr.rel (%p163_p2) target bundleno = 648 (0x288), region = 36  ;;  %386 = vmatprep.subr.bf16.mxu1 (!%p163_p2), %v1326_v1  ;;  %571 = vmatprep.subr.bf16.mxu0 (!%p163_p2), %v1326_v1  ;;  %v1240_v2 = vld [vmem:[%s1630_s1] sm:$0xff] (!%p163_p2)   ;;  %v1242_v4 = vld [vmem:[%s1630_s1 + $0x8] sm:$0xff] (!%p163_p2)   ;;  %v1244_v6 = vld [vmem:[%s1630_s1 + $0x10] sm:$0xff] (!%p163_p2)  }
   0x7   : > { %387 = vmatpush1.bf16.msra.mxu1 (!%p163_p2), %v1239_v0  ;;  %572 = vmatpush1.bf16.msra.mxu0 (!%p163_p2), %v1240_v2  ;;  %v1245_v7 = vld [vmem:[%s1630_s1 + $0x78] sm:$0xff] (!%p163_p2)   ;;  %v1247_v9 = vld [vmem:[%s1630_s1 + $0x80] sm:$0xff] (!%p163_p2)   ;;  %v1249_v11 = vld [vmem:[%s1630_s1 + $0x88] sm:$0xff] (!%p163_p2)  }
   0x8   : > { %388 = vmatprep.subr.bf16.mxu1 (!%p163_p2), %v1326_v1  ;;  %573 = vmatprep.subr.bf16.mxu0 (!%p163_p2), %v1326_v1  ;;  %v1246_v8 = vld [vmem:[%s1630_s1 + $0x18] sm:$0xff] (!%p163_p2)   ;;  %v1248_v10 = vld [vmem:[%s1630_s1 + $0x20] sm:$0xff] (!%p163_p2)   ;;  %v1250_v12 = vld [vmem:[%s1630_s1 + $0x28] sm:$0xff] (!%p163_p2)  }
   0x9   : > { %v1251_v13 = vld [vmem:[%s1630_s1 + $0x90] sm:$0xff] (!%p163_p2)   ;;  %v1253_v16 = vld [vmem:[%s1630_s1 + $0x98] sm:$0xff] (!%p163_p2)   ;;  %v1255_v19 = vld [vmem:[%s1630_s1 + $0xa0] sm:$0xff] (!%p163_p2)  }
   0xa   : > { %v1252_v14 = vld [vmem:[%s1630_s1 + $0x30] sm:$0xff] (!%p163_p2)   ;;  %v1254_v18 = vld [vmem:[%s1630_s1 + $0x38] sm:$0xff] (!%p163_p2)   ;;  %v1256_v20 = vld [vmem:[%s1630_s1 + $0x40] sm:$0xff] (!%p163_p2)  }
   0xb   : > { %389 = vmatpush1.bf16.msra.mxu1 (!%p163_p2), %v1241_v3  ;;  %574 = vmatpush1.bf16.msra.mxu0 (!%p163_p2), %v1242_v4  ;;  %v1257_v21 = vld [vmem:[%s1630_s1 + $0xa8] sm:$0xff] (!%p163_p2)   ;;  %v1259_v23 = vld [vmem:[%s1630_s1 + $0xb0] sm:$0xff] (!%p163_p2)   ;;  %v1261_v25 = vld [vmem:[%s1630_s1 + $0xb8] sm:$0xff] (!%p163_p2)  }
   0xc   : > { %390 = vmatprep.subr.bf16.mxu1 (!%p163_p2), %v1326_v1  ;;  %575 = vmatprep.subr.bf16.mxu0 (!%p163_p2), %v1326_v1  ;;  %v1258_v22 = vld [vmem:[%s1630_s1 + $0x48] sm:$0xff] (!%p163_p2)   ;;  %v1260_v24 = vld [vmem:[%s1630_s1 + $0x50] sm:$0xff] (!%p163_p2)   ;;  %v1262_v26 = vld [vmem:[%s1630_s1 + $0x58] sm:$0xff] (!%p163_p2)  }
   0xd   : > { %s1635_s16 = smov (!%p188_p3, %s1044_s16), 3  ;;  %v1269_v29 = vld [vmem:[%s1630_s1 + $0xc0] sm:$0xff]   ;;  %v1270_v32 = vld [vmem:[%s1630_s1 + $0xc8] sm:$0xff]   ;;  %v1271_v34 = vld [vmem:[%s1630_s1 + $0xd0] sm:$0xff]  }
   0xe   : > { %s1229_s13 = smul.u32 160, %s1635_s16  ;;  %v1272_v38 = vld [vmem:[%s1630_s1 + $0xd8] sm:$0xff]   ;;  %v1273_v40 = vld [vmem:[%s1630_s1 + $0xe0] sm:$0xff]   ;;  %v1279_v44 = vld [vmem:[%s1630_s1 + $0xe8] sm:$0xff]   ;;  %s1184_s24 = sshll.u32 %s1635_s16, 6 }
   0xf   : > { %391 = vmatpush1.bf16.msra.mxu1 %v1243_v5  ;;  %576 = vmatpush1.bf16.msra.mxu0 %v1244_v6  ;;  %v1281_v46 = vld [vmem:[%s1630_s1 + $0xf0] sm:$0xff]   ;;  %v1287_v48 = vld [vmem:[%s1630_s1 + $0xf8] sm:$0xff]   ;;  %v1289_v49 = vld [vmem:[%s1630_s1 + $0x100] sm:$0xff]   ;;  %s1609_s29 = scalar_lea.vmem %s1633_s4, %s1184_s24 }
  0x10   : > { %392 = vmatprep.subr.bf16.mxu1 %v1326_v1  ;;  %577 = vmatprep.subr.bf16.mxu0 %v1326_v1  ;;  %s1421_s22 = scalar_lea.vmem %s1629_s0, %s1229_s13  ;;  %v1295_v50 = vld [vmem:[%s1630_s1 + $0x108] sm:$0xff]   ;;  %v1297_v51 = vld [vmem:[%s1630_s1 + $0x110] sm:$0xff]   ;;  %v1298_v52 = vld [vmem:[%s1630_s1 + $0x118] sm:$0xff]  }
  0x11   : > { %v1265_v15 = vld [vmem:[%s1421_s22 + $0x54] ss:$8 sps:$4 sm:$0xff]   ;;  %v1268_v17 = vld [vmem:[%s1421_s22 + $0x4] ss:$8 sps:$4 sm:$0xff]   ;;  %v1263_v27 = vld [vmem:[%s1421_s22 + $0x50] ss:$8 sps:$4 sm:$0xff]  }
  0x12   : > { %1104 = vmatprep.mubr.msk.bf16.mxu1 %vm373_vm0, %v1265_v15  ;;  %1128 = vmatprep.mubr.msk.bf16.mxu0 %vm373_vm0, %v1268_v17  ;;  %v1266_v28 = vld [vmem:[%s1421_s22] ss:$8 sps:$4 sm:$0xff]   ;;  %v1274_v30 = vld [vmem:[%s1421_s22 + $0x14] ss:$8 sps:$4 sm:$0xff]   ;;  %v1276_v31 = vld [vmem:[%s1421_s22 + $0x64] ss:$8 sps:$4 sm:$0xff]  }
  0x13   : > { %393 = vmatpush1.bf16.msra.mxu1 %v1245_v7  ;;  %578 = vmatpush1.bf16.msra.mxu0 %v1246_v8  ;;  %v1280_v33 = vld [vmem:[%s1421_s22 + $0x60] ss:$8 sps:$4 sm:$0xff]   ;;  %v1493_v35 = vld [vmem:[%s1421_s22 + $0x10] ss:$8 sps:$4 sm:$0xff]   ;;  %v1498_v36 = vld [vmem:[%s1421_s22 + $0x24] ss:$8 sps:$4 sm:$0xff]  }
  0x14   : > { %394 = vmatprep.subr.bf16.mxu1 %v1326_v1  ;;  %579 = vmatprep.subr.bf16.mxu0 %v1326_v1  ;;  %v1284_v37 = vld [vmem:[%s1421_s22 + $0x74] ss:$8 sps:$4 sm:$0xff]   ;;  %v1288_v39 = vld [vmem:[%s1421_s22 + $0x70] ss:$8 sps:$4 sm:$0xff]   ;;  %v1286_v41 = vld [vmem:[%s1421_s22 + $0x20] ss:$8 sps:$4 sm:$0xff]  }
  0x15   : > { %v1290_v42 = vld [vmem:[%s1421_s22 + $0x34] ss:$8 sps:$4 sm:$0xff]   ;;  %v1292_v43 = vld [vmem:[%s1421_s22 + $0x84] ss:$8 sps:$4 sm:$0xff]   ;;  %v1296_v45 = vld [vmem:[%s1421_s22 + $0x80] ss:$8 sps:$4 sm:$0xff]  }
  0x16   : > { %v1294_v47 = vld [vmem:[%s1421_s22 + $0x30] ss:$8 sps:$4 sm:$0xff]   ;;  %v1299_v53 = vld [vmem:[%s1421_s22 + $0x44] ss:$8 sps:$4 sm:$0xff]   ;;  %v1301_v54 = vld [vmem:[%s1421_s22 + $0x40] ss:$8 sps:$4 sm:$0xff]  }
  0x17   : > { %395 = vmatpush1.bf16.msra.mxu1 %v1247_v9  ;;  %580 = vmatpush1.bf16.msra.mxu0 %v1248_v10 }
  0x18   : > { %396 = vmatprep.subr.bf16.mxu1 %v1326_v1  ;;  %581 = vmatprep.subr.bf16.mxu0 %v1326_v1 }
  0x1b   : > { %397 = vmatpush1.bf16.msra.mxu1 %v1249_v11  ;;  %582 = vmatpush1.bf16.msra.mxu0 %v1250_v12 }
  0x1c   : > { %398 = vmatprep.subr.bf16.mxu1 %v1326_v1  ;;  %583 = vmatprep.subr.bf16.mxu0 %v1326_v1 }
  0x1f   : > { %399 = vmatpush1.bf16.msra.mxu1 %v1251_v13  ;;  %584 = vmatpush1.bf16.msra.mxu0 %v1252_v14 }
  0x20   : > { %400 = vmatprep.subr.bf16.mxu1 %v1326_v1  ;;  %585 = vmatprep.subr.bf16.mxu0 %v1326_v1 }
  0x23   : > { %401 = vmatpush1.bf16.msra.mxu1 %v1253_v16  ;;  %586 = vmatpush1.bf16.msra.mxu0 %v1254_v18 }
  0x24   : > { %402 = vmatprep.subr.bf16.mxu1 %v1326_v1  ;;  %587 = vmatprep.subr.bf16.mxu0 %v1326_v1 }
  0x27   : > { %403 = vmatpush1.bf16.msra.mxu1 %v1255_v19  ;;  %588 = vmatpush1.bf16.msra.mxu0 %v1256_v20 }
  0x28   : > { %404 = vmatprep.subr.bf16.mxu1 %v1326_v1  ;;  %589 = vmatprep.subr.bf16.mxu0 %v1326_v1 }
  0x2b   : > { %405 = vmatpush1.bf16.msra.mxu1 %v1257_v21  ;;  %590 = vmatpush1.bf16.msra.mxu0 %v1258_v22 }
  0x2c   : > { %406 = vmatprep.subr.bf16.mxu1 %v1326_v1  ;;  %591 = vmatprep.subr.bf16.mxu0 %v1326_v1 }
  0x2f   : > { %407 = vmatpush1.bf16.msra.mxu1 %v1259_v23  ;;  %592 = vmatpush1.bf16.msra.mxu0 %v1260_v24 }
  0x30   : > { %408 = vmatprep.subr.bf16.mxu1 %v1326_v1  ;;  %593 = vmatprep.subr.bf16.mxu0 %v1326_v1 }
  0x33   : > { %409 = vmatpush1.bf16.msra.mxu1 %v1261_v25  ;;  %594 = vmatpush1.bf16.msra.mxu0 %v1262_v26 }
  0x34   : > { %1185 = vmatprep.subr.bf16.mxu1 %v1326_v1  ;;  %789 = vmatprep.subr.bf16.mxu0 %v1326_v1 }
  0x36   : > { %419 = vmatmul.mubr.bf16.vlgmr.msra.gmra.mrb[0].mxu1 %v1263_v27  ;;  %604 = vmatmul.mubr.bf16.vlgmr.msra.gmra.mrb[0].mxu0 %v1266_v28 }
  0x37   : > { %1197 = vmatpush1.bf16.msra.mxu1 %v1269_v29  ;;  %790 = vmatpush1.bf16.msra.mxu0 %v1269_v29 }
  0x38   : > { %1186 = vmatprep.subr.bf16.mxu1 %v1326_v1  ;;  %791 = vmatprep.subr.bf16.mxu0 %v1326_v1 }
  0x39   : > { %1129 = vmatprep.mubr.msk.bf16.mxu0 %vm373_vm0, %v1274_v30  ;;  %1105 = vmatprep.mubr.msk.bf16.mxu1 %vm373_vm0, %v1276_v31 }
  0x3b   : > { %1198 = vmatpush1.bf16.msra.mxu1 %v1270_v32  ;;  %792 = vmatpush1.bf16.msra.mxu0 %v1270_v32 }
  0x3c   : > { %1187 = vmatprep.subr.bf16.mxu1 %v1326_v1  ;;  %793 = vmatprep.subr.bf16.mxu0 %v1326_v1 }
  0x3e   : > { %427 = vmatmul.mubr.bf16.gmra.mrb[4].mxu1 %v1280_v33  ;;  %612 = vmatmul.mubr.bf16.gmra.mrb[4].mxu0 %v1493_v35 }
  0x3f   : > { %1199 = vmatpush1.bf16.msra.mxu1 %v1271_v34  ;;  %794 = vmatpush1.bf16.msra.mxu0 %v1271_v34 }
  0x40   : > { %1188 = vmatprep.subr.bf16.mxu1 %v1326_v1  ;;  %795 = vmatprep.subr.bf16.mxu0 %v1326_v1 }
  0x41   : > { %1130 = vmatprep.mubr.msk.bf16.mxu0 %vm373_vm0, %v1498_v36  ;;  %1106 = vmatprep.mubr.msk.bf16.mxu1 %vm373_vm0, %v1284_v37 }
  0x43   : > { %1200 = vmatpush1.bf16.msra.mxu1 %v1272_v38  ;;  %796 = vmatpush1.bf16.msra.mxu0 %v1272_v38 }
  0x44   : > { %1189 = vmatprep.subr.bf16.mxu1 %v1326_v1  ;;  %797 = vmatprep.subr.bf16.mxu0 %v1326_v1 }
  0x46   : > { %435 = vmatmul.mubr.bf16.gmra.mrb[8].mxu1 %v1288_v39  ;;  %620 = vmatmul.mubr.bf16.gmra.mrb[8].mxu0 %v1286_v41 }
  0x47   : > { %1201 = vmatpush1.bf16.msra.mxu1 %v1273_v40  ;;  %798 = vmatpush1.bf16.msra.mxu0 %v1273_v40 }
  0x48   : > { %1190 = vmatprep.subr.bf16.mxu1 %v1326_v1  ;;  %799 = vmatprep.subr.bf16.mxu0 %v1326_v1 }
  0x49   : > { %1131 = vmatprep.mubr.msk.bf16.mxu0 %vm373_vm0, %v1290_v42  ;;  %1107 = vmatprep.mubr.msk.bf16.mxu1 %vm373_vm0, %v1292_v43 }
  0x4b   : > { %1202 = vmatpush1.bf16.msra.mxu1 %v1279_v44  ;;  %800 = vmatpush1.bf16.msra.mxu0 %v1279_v44 }
  0x4c   : > { %1191 = vmatprep.subr.bf16.mxu1 %v1326_v1  ;;  %801 = vmatprep.subr.bf16.mxu0 %v1326_v1 }
  0x4e   : > { %443 = vmatmul.mubr.bf16.gmra.mrb[12].mxu1 %v1296_v45  ;;  %628 = vmatmul.mubr.bf16.gmra.mrb[12].mxu0 %v1294_v47 }
  0x4f   : > { %1203 = vmatpush1.bf16.msra.mxu1 %v1281_v46  ;;  %802 = vmatpush1.bf16.msra.mxu0 %v1281_v46 }
  0x50   : > { %1192 = vmatprep.subr.bf16.mxu1 %v1326_v1  ;;  %803 = vmatprep.subr.bf16.mxu0 %v1326_v1 }
  0x51   : > { %1176 = vmatprep.mubr.msk.bf16.mxu0 %vm373_vm0, %v1274_v30  ;;  %1178 = vmatprep.mubr.msk.bf16.mxu1 %vm373_vm0, %v1290_v42 }
  0x53   : > { %1204 = vmatpush1.bf16.msra.mxu1 %v1287_v48  ;;  %804 = vmatpush1.bf16.msra.mxu0 %v1287_v48 }
  0x54   : > { %1193 = vmatprep.subr.bf16.mxu1 %v1326_v1  ;;  %805 = vmatprep.subr.bf16.mxu0 %v1326_v1 }
  0x57   : > { %1205 = vmatpush1.bf16.msra.mxu1 %v1289_v49  ;;  %806 = vmatpush1.bf16.msra.mxu0 %v1289_v49 }
  0x58   : > { %1194 = vmatprep.subr.bf16.mxu1 %v1326_v1  ;;  %807 = vmatprep.subr.bf16.mxu0 %v1326_v1 }
  0x5b   : > { %1206 = vmatpush1.bf16.msra.mxu1 %v1295_v50  ;;  %808 = vmatpush1.bf16.msra.mxu0 %v1295_v50 }
  0x5c   : > { %1195 = vmatprep.subr.bf16.mxu1 %v1326_v1  ;;  %809 = vmatprep.subr.bf16.mxu0 %v1326_v1 }
  0x5f   : > { %1207 = vmatpush1.bf16.msra.mxu1 %v1297_v51  ;;  %810 = vmatpush1.bf16.msra.mxu0 %v1297_v51 }
  0x60   : > { %1196 = vmatprep.subr.bf16.mxu1 %v1326_v1  ;;  %811 = vmatprep.subr.bf16.mxu0 %v1326_v1 }
  0x63   : > { %1208 = vmatpush1.bf16.msra.mxu1 %v1298_v52  ;;  %812 = vmatpush1.bf16.msra.mxu0 %v1298_v52 }
  0x66   : > { %838 = vmatmul.mubr.bf16.vlgmr.msra.gmra.mrb[16].mxu1 %v1294_v47  ;;  %822 = vmatmul.mubr.bf16.vlgmr.msra.gmra.mrb[0].mxu0 %v1493_v35 }
  0x67   : > { %1179 = vmatprep.mubr.msk.bf16.mxu1 %vm373_vm0, %v1299_v53  ;;  %1177 = vmatprep.mubr.msk.bf16.mxu0 %vm373_vm0, %v1498_v36 }
  0x6e   : > { %846 = vmatmul.mubr.bf16.gmra.mrb[20].mxu1 %v1301_v54  ;;  %830 = vmatmul.mubr.bf16.gmra.mrb[4].mxu0 %v1286_v41 }
 0x109   : > { %v420_v55 = vpop.f32.mrb[0].mxu1 }
 0x10a   : > { %v422_v56 = vpop.f32.mrb[1].mxu1 }
 0x10b   : > { %v423_v57 = vpop.f32.mrb[2].mxu1 }
 0x10c   : > { %v425_v58 = vpop.f32.mrb[3].mxu1 }
 0x111   : > { %v428_v59 = vpop.f32.mrb[4].mxu1 }
 0x112   : > { %v430_v60 = vpop.f32.mrb[5].mxu1 }
 0x113   : > { %v431_v61 = vpop.f32.mrb[6].mxu1 }
 0x114   : > { %v433_v62 = vpop.f32.mrb[7].mxu1 }
 0x119   : > { %v436_v63 = vpop.f32.mrb[8].mxu1  ;;  %v621_v0 = vpop.f32.mrb[8].mxu0 }
 0x11a   : > { %v438_v1 = vpop.f32.mrb[9].mxu1  ;;  %v622_v2 = vadd.f32 %v621_v0, %v436_v63  ;;  %v623_v3 = vpop.f32.mrb[9].mxu0 }
 0x11b   : > { %v439_v4 = vpop.f32.mrb[10].mxu1  ;;  %v624_v5 = vpop.f32.mrb[10].mxu0 }
 0x11c   : > { %v441_v6 = vpop.f32.mrb[11].mxu1  ;;  %v625_v7 = vadd.f32 %v624_v5, %v439_v4  ;;  %v626_v8 = vpop.f32.mrb[11].mxu0 }
 0x121   : > { %v444_v9 = vpop.f32.mrb[12].mxu1  ;;  %v629_v10 = vpop.f32.mrb[12].mxu0 }
 0x122   : > { %v446_v11 = vpop.f32.mrb[13].mxu1  ;;  %v630_v12 = vadd.f32 %v629_v10, %v444_v9  ;;  %v631_v13 = vpop.f32.mrb[13].mxu0 }
 0x123   : > { %v447_v14 = vpop.f32.mrb[14].mxu1  ;;  %v632_v15 = vpop.f32.mrb[14].mxu0 }
 0x124   : > { %v449_v16 = vpop.f32.mrb[15].mxu1  ;;  %v633_v17 = vadd.f32 %v632_v15, %v447_v14  ;;  %v634_v18 = vpop.f32.mrb[15].mxu0 }
 0x139   : > { %v839_v19 = vpop.f32.mrb[16].mxu1  ;;  %v823_v20 = vpop.f32.mrb[0].mxu0 }
 0x13a   : > { %v858_v21 = vadd.f32 %v839_v19, %v622_v2  ;;  %v841_v22 = vpop.f32.mrb[17].mxu1  ;;  %v1209_v23 = vadd.f32 %v823_v20, %v420_v55  ;;  %v825_v24 = vpop.f32.mrb[1].mxu0 }
 0x13b   : > { %v842_v25 = vpop.f32.mrb[18].mxu1  ;;  %v826_v26 = vpop.f32.mrb[2].mxu0 }
 0x13c   : > { %v859_v27 = vadd.f32 %v842_v25, %v625_v7  ;;  %v844_v28 = vpop.f32.mrb[19].mxu1  ;;  %v1210_v29 = vadd.f32 %v826_v26, %v423_v57  ;;  %862 = vadd.xlane.f32.xlu0 %v1209_v23  ;;  %v828_v30 = vpop.f32.mrb[3].mxu0  ;;  %v1180_v25 = vld [vmem:[%s1631_s2] ss:$0 sm:$0xff] }
 0x13e   : > { %872 = vadd.xlane.f32.xlu1 %v859_v27 }
 0x140   : > { %870 = vadd.xlane.f32.xlu0 %v858_v21 }
 0x141   : > { %v847_v31 = vpop.f32.mrb[20].mxu1  ;;  %v831_v32 = vpop.f32.mrb[4].mxu0 }
 0x142   : > { %v860_v33 = vadd.f32 %v847_v31, %v630_v12  ;;  %v849_v34 = vpop.f32.mrb[21].mxu1  ;;  %v1211_v35 = vadd.f32 %v831_v32, %v428_v59  ;;  %v833_v36 = vpop.f32.mrb[5].mxu0 }
 0x143   : > { %v850_v37 = vpop.f32.mrb[22].mxu1  ;;  %v834_v38 = vpop.f32.mrb[6].mxu0 }
 0x144   : > { %v861_v39 = vadd.f32 %v850_v37, %v633_v17  ;;  %v852_v40 = vpop.f32.mrb[23].mxu1  ;;  %v1212_v41 = vadd.f32 %v834_v38, %v431_v61  ;;  %v836_v42 = vpop.f32.mrb[7].mxu0  ;;  %866 = vadd.xlane.f32.xlu1 %v1211_v35  ;;  %864 = vadd.xlane.f32.xlu0 %v1210_v29 }
 0x148   : > { %868 = vadd.xlane.f32.xlu1 %v1212_v41  ;;  %874 = vadd.xlane.f32.xlu0 %v860_v33 }
 0x14c   : > { %876 = vadd.xlane.f32.xlu1 %v861_v39 }
 0x1c9   : > { %v863_v43 = vpop.xlane.xlu0 %862 }
 0x1ca   : > { %v879_v44 = vmul.f32 0.0078125, %v863_v43 }
 0x1cb   : > { %v873_v46 = vpop.xlane.xlu1 %872 }
 0x1cc   : > { %v1566_v45 = vsub.f32 %v1209_v23, %v879_v44  ;;  %v884_v51 = vmul.f32 0.0078125, %v873_v46 }
 0x1cd   : > { %v871_v47 = vpop.xlane.xlu0 %870 }
 0x1ce   : > { %v883_v48 = vmul.f32 0.0078125, %v871_v47  ;;  %v895_v49 = vmul.f32 %v1566_v45, %v1566_v45  ;;  %v1578_v59 = vsub.f32 %v859_v27, %v884_v51 }
 0x1d0   : > { %v1570_v50 = vsub.f32 %v858_v21, %v883_v48  ;;  %903 = vadd.xlane.f32.xlu0 %v895_v49  ;;  %v900_v6 = vmul.f32 %v1578_v59, %v1578_v59 }
 0x1d1   : > { %v867_v52 = vpop.xlane.xlu1 %866  ;;  %v865_v53 = vpop.xlane.xlu0 %864 }
 0x1d2   : > { %v881_v54 = vmul.f32 0.0078125, %v867_v52  ;;  %v880_v55 = vmul.f32 0.0078125, %v865_v53  ;;  %v899_v56 = vmul.f32 %v1570_v50, %v1570_v50 }
 0x1d4   : > { %v1574_v57 = vsub.f32 %v1211_v35, %v881_v54  ;;  %v1576_v58 = vsub.f32 %v1210_v29, %v880_v55  ;;  %911 = vadd.xlane.f32.xlu0 %v899_v56 }
 0x1d5   : > { %v869_v60 = vpop.xlane.xlu1 %868  ;;  %v875_v61 = vpop.xlane.xlu0 %874 }
 0x1d6   : > { %v882_v62 = vmul.f32 0.0078125, %v869_v60  ;;  %v885_v63 = vmul.f32 0.0078125, %v875_v61  ;;  %v897_v0 = vmul.f32 %v1574_v57, %v1574_v57  ;;  %v896_v1 = vmul.f32 %v1576_v58, %v1576_v58 }
 0x1d8   : > { %v1584_v2 = vsub.f32 %v860_v33, %v885_v63  ;;  %907 = vadd.xlane.f32.xlu0 %v897_v0  ;;  %905 = vadd.xlane.f32.xlu1 %v896_v1  ;;  %v1586_v4 = vsub.f32 %v1212_v41, %v882_v62  ;;  %v1181_v33 = vld [vmem:[%s1632_s3] ss:$0 sm:$0xff] }
 0x1d9   : > { %v877_v3 = vpop.xlane.xlu1 %876 }
 0x1da   : > { %v886_v5 = vmul.f32 0.0078125, %v877_v3  ;;  %v901_v7 = vmul.f32 %v1584_v2, %v1584_v2  ;;  %v898_v9 = vmul.f32 %v1586_v4, %v1586_v4 }
 0x1dc   : > { %913 = vadd.xlane.f32.xlu1 %v900_v6  ;;  %915 = vadd.xlane.f32.xlu0 %v901_v7  ;;  %v1592_v8 = vsub.f32 %v861_v39, %v886_v5 }
 0x1de   : > { %v902_v10 = vmul.f32 %v1592_v8, %v1592_v8 }
 0x1e0   : > { %909 = vadd.xlane.f32.xlu1 %v898_v9 }
 0x1e4   : > { %917 = vadd.xlane.f32.xlu1 %v902_v10 }
 0x25d   : > { %v904_v11 = vpop.xlane.xlu0 %903 }
 0x25e   : > { %v919_v12 = vmul.f32 0.0078125, %v904_v11 }
 0x260   : > { %v928_v13 = vadd.f32 1e-05, %v919_v12 }
 0x261   : > { %v912_v14 = vpop.xlane.xlu0 %911 }
 0x262   : > { %1302 = vrsqrt.f32 %v928_v13  ;;  %v923_v15 = vmul.f32 0.0078125, %v912_v14 }
 0x264   : > { %v932_v16 = vadd.f32 1e-05, %v923_v15 }
 0x265   : > { %v906_v17 = vpop.xlane.xlu1 %905  ;;  %v908_v18 = vpop.xlane.xlu0 %907 }
 0x266   : > { %1304 = vrsqrt.f32 %v932_v16  ;;  %v920_v19 = vmul.f32 0.0078125, %v906_v17  ;;  %v921_v20 = vmul.f32 0.0078125, %v908_v18 }
 0x268   : > { %v929_v21 = vadd.f32 1e-05, %v920_v19  ;;  %v930_v22 = vadd.f32 1e-05, %v921_v20 }
 0x269   : > { %v914_v23 = vpop.xlane.xlu1 %913  ;;  %v916_v24 = vpop.xlane.xlu0 %915 }
 0x26a   : > { %1306 = vrsqrt.f32 %v929_v21  ;;  %v924_v26 = vmul.f32 0.0078125, %v914_v23  ;;  %v925_v27 = vmul.f32 0.0078125, %v916_v24 }
 0x26b   : > { %1308 = vrsqrt.f32 %v930_v22 }
 0x26c   : > { %v1303_v28 = vpop.eup %1302  ;;  %v933_v29 = vadd.f32 1e-05, %v924_v26  ;;  %v934_v30 = vadd.f32 1e-05, %v925_v27 }
 0x26d   : > { %v950_v31 = vmul.f32 %v1303_v28, %v1180_v25  ;;  %v910_v32 = vpop.xlane.xlu1 %909 }
 0x26e   : > { %1310 = vrsqrt.f32 %v933_v29  ;;  %v922_v34 = vmul.f32 0.0078125, %v910_v32 }
 0x26f   : > { %v958_v35 = vmul.f32 %v950_v31, %v1566_v45  ;;  %1312 = vrsqrt.f32 %v934_v30 }
 0x270   : > { %v1305_v36 = vpop.eup %1304  ;;  %v931_v37 = vadd.f32 1e-05, %v922_v34 }
 0x271   : > { %v973_v38 = vadd.f32 %v1181_v33, %v958_v35  ;;  %v954_v39 = vmul.f32 %v1305_v36, %v1180_v25  ;;  %v918_v40 = vpop.xlane.xlu1 %917 }
 0x272   : > { %1314 = vrsqrt.f32 %v931_v37  ;;  %v926_v41 = vmul.f32 0.0078125, %v918_v40 }
 0x273   : > { %981 = vst [vmem:[%s1609_s29] sm:$0xff] %v973_v38  ;;  %v962_v42 = vmul.f32 %v954_v39, %v1570_v50 }
 0x274   : > { %v1307_v43 = vpop.eup %1306  ;;  %v935_v44 = vadd.f32 1e-05, %v926_v41 }
 0x275   : > { %v1309_v45 = vpop.eup %1308  ;;  %v977_v46 = vadd.f32 %v1181_v33, %v962_v42  ;;  %v951_v47 = vmul.f32 %v1307_v43, %v1180_v25 }
 0x276   : > { %v952_v48 = vmul.f32 %v1309_v45, %v1180_v25  ;;  %1316 = vrsqrt.f32 %v935_v44 }
 0x277   : > { %985 = vst [vmem:[%s1609_s29 + $0x20] sm:$0xff] %v977_v46  ;;  %v959_v49 = vmul.f32 %v951_v47, %v1576_v58 }
 0x278   : > { %v1311_v51 = vpop.eup %1310  ;;  %v960_v52 = vmul.f32 %v952_v48, %v1574_v57 }
 0x279   : > { %v1313_v53 = vpop.eup %1312  ;;  %v974_v54 = vadd.f32 %v1181_v33, %v959_v49  ;;  %v955_v50 = vmul.f32 %v1311_v51, %v1180_v25 }
 0x27a   : > { %v975_v55 = vadd.f32 %v1181_v33, %v960_v52  ;;  %v956_v56 = vmul.f32 %v1313_v53, %v1180_v25 }
 0x27b   : > { %982 = vst [vmem:[%s1609_s29 + $0x8] sm:$0xff] %v974_v54  ;;  %v963_v60 = vmul.f32 %v955_v50, %v1578_v59 }
 0x27c   : > { %v1315_v61 = vpop.eup %1314  ;;  %983 = vst [vmem:[%s1609_s29 + $0x10] sm:$0xff] %v975_v55  ;;  %v964_v62 = vmul.f32 %v956_v56, %v1584_v2 }
 0x27d   : > { %v978_v58 = vadd.f32 %v1181_v33, %v963_v60  ;;  %v953_v63 = vmul.f32 %v1315_v61, %v1180_v25 }
 0x27e   : > { %v979_v0 = vadd.f32 %v1181_v33, %v964_v62 }
 0x27f   : > { %986 = vst [vmem:[%s1609_s29 + $0x28] sm:$0xff] %v978_v58  ;;  %v961_v57 = vmul.f32 %v953_v63, %v1586_v4 }
 0x280   : > { %v1317_v1 = vpop.eup %1316  ;;  %987 = vst [vmem:[%s1609_s29 + $0x30] sm:$0xff] %v979_v0 }
 0x281   : > { %v976_v3 = vadd.f32 %v1181_v33, %v961_v57  ;;  %v957_v5 = vmul.f32 %v1317_v1, %v1180_v25 }
 0x283   : > { %984 = vst [vmem:[%s1609_s29 + $0x18] sm:$0xff] %v976_v3  ;;  %v965_v6 = vmul.f32 %v957_v5, %v1592_v8 }
 0x285   : > { %v980_v7 = vadd.f32 %v1181_v33, %v965_v6 }
 0x287   : > { %988 = vst [vmem:[%s1609_s29 + $0x38] sm:$0xff] %v980_v7 }
 0x288 PF: > { %s14_s15 = sadd.s32 1, %s1324_s15  }
 0x289   : > { %p11_p4 = scmp.ge.s32.totalorder %s14_s15, 6  }
 0x28b   :  { %13 = sbr.rel (!%p11_p4) target bundleno = 1 (0x1), region = 69 }

</bundles_post_ra>
